<compile_context>
chip_gen: v6e
topology: v6e:2x2x1
jax: 0.10.0
libtpu: 0.0.40
codegen_flags: <defaults>
</compile_context>

<pallas_src>
import functools

import numpy as np

import jax
import jax.numpy as jnp
from jax.experimental import pallas as pl
from jax.experimental.pallas import tpu as pltpu


# ---------------------------------------------------------------------------
# Init-time weight packing: conv (+ folded BN) -> dense matmul over NCHW-flat
# activations.  Runs once, outside the forward path.
# ---------------------------------------------------------------------------
def _conv_to_dense(w, hin, win, stride, pad):
    """w: (Cout, Cin, kh, kw) -> T: (Cin*hin*win, Cout*hout*wout), plus (hout, wout).

    T encodes the convolution (stride + zero padding included) so that
      y_flat[b, co*hout*wout + oh*wout + ow] = sum_k x_flat[b, k] * T[k, col]
    with x_flat the NCHW-flattened input (k = ci*hin*win + h*win + w).
    """
    w = np.asarray(w, np.float32)
    cout, cin, kh, kw = w.shape
    hout = (hin + 2 * pad - kh) // stride + 1
    wout = (win + 2 * pad - kw) // stride + 1
    t = np.zeros((cin * hin * win, cout * hout * wout), np.float32)
    ci_idx = np.arange(cin) * (hin * win)
    co_idx = np.arange(cout) * (hout * wout)
    for oh in range(hout):
        for ow in range(wout):
            col = co_idx + oh * wout + ow
            for i in range(kh):
                h = stride * oh + i - pad
                if not 0 <= h < hin:
                    continue
                for j in range(kw):
                    wc = stride * ow + j - pad
                    if not 0 <= wc < win:
                        continue
                    row = ci_idx + h * win + wc
                    t[np.ix_(row, col)] = w[:, :, i, j].T  # (Cin, Cout)
    return t, (hout, wout)


# ---------------------------------------------------------------------------
# Fused Pallas kernel: conv1 -> conv2 -> last_conv, intermediates in VMEM/vregs
# ---------------------------------------------------------------------------
def _fused_encoder_kernel(x_ref, t1_ref, b1_ref, t2_ref, b2_ref, t3_ref, b3_ref,
                          s1_ref, s2_ref, out_ref, *, compute_dtype):
    cd = compute_dtype
    # conv1 (+ folded BN) + LeakyReLU(0.2)
    h = jnp.dot(x_ref[...].astype(cd), t1_ref[...],
                preferred_element_type=jnp.float32) + b1_ref[...]
    h = jnp.where(h >= 0, h, 0.2 * h)
    s1_ref[...] = h.astype(s1_ref.dtype)
    # conv2 (+ folded BN) + LeakyReLU(0.2)
    h = jnp.dot(h.astype(cd), t2_ref[...],
                preferred_element_type=jnp.float32) + b2_ref[...]
    h = jnp.where(h >= 0, h, 0.2 * h)
    s2_ref[...] = h.astype(s2_ref.dtype)
    # last_conv (+ folded BN) + Tanh
    h = jnp.dot(h.astype(cd), t3_ref[...],
                preferred_element_type=jnp.float32) + b3_ref[...]
    out_ref[...] = jnp.tanh(h).astype(out_ref.dtype)


# ---------------------------------------------------------------------------
# BaseEncoder forward (DCGAN-style instantiation)
# ---------------------------------------------------------------------------
class BaseEncoderPallas:
    def __init__(self, raw_params, nh, in_hw=(16, 16),
                 compute_dtype=jnp.bfloat16, batch_tile=128):
        self.nh = nh
        self.compute_dtype = compute_dtype
        # batch_tile can be raised (e.g. 256-512) on 128 MiB-VMEM chips (v5e/v6e).
        self.batch_tile = batch_tile

        (w1, b1), (w2, b2) = raw_params["conv"]
        w3, b3 = raw_params["last_conv"]
        hin, win = in_hw
        t1, hw1 = _conv_to_dense(w1, hin, win, stride=2, pad=1)
        t2, hw2 = _conv_to_dense(w2, hw1[0], hw1[1], stride=2, pad=1)
        t3, hw3 = _conv_to_dense(w3, hw2[0], hw2[1], stride=1, pad=0)
        assert hw3 == (1, 1) and w3.shape[0] == nh, "last_conv must reduce to (nh,1,1)"

        # Weights packed once in the MXU operand dtype; biases broadcast over the
        # flattened spatial positions and kept in f32 (added to the f32 accumulator).
        self.t1 = jnp.asarray(t1, compute_dtype)
        self.t2 = jnp.asarray(t2, compute_dtype)
        self.t3 = jnp.asarray(t3, compute_dtype)
        self.b1 = jnp.asarray(np.repeat(np.asarray(b1, np.float32), hw1[0] * hw1[1])[None, :])
        self.b2 = jnp.asarray(np.repeat(np.asarray(b2, np.float32), hw2[0] * hw2[1])[None, :])
        self.b3 = jnp.asarray(np.asarray(b3, np.float32)[None, :])

        self._skip_chw = [(w1.shape[0], *hw1), (w2.shape[0], *hw2)]
        self._fwd = jax.jit(self._forward)

    def _forward(self, x):
        b = x.shape[0]
        xf = x.reshape(b, -1)                      # NCHW flatten: no transposes needed
        k1 = xf.shape[1]
        assert k1 == self.t1.shape[0], "input channel/spatial shape mismatch"
        n1, n2, n3 = self.t1.shape[1], self.t2.shape[1], self.t3.shape[1]

        tb = min(b, self.batch_tile)
        bp = pl.cdiv(b, tb) * tb
        if bp != b:                                # only for batches not divisible by tb
            xf = jnp.concatenate([xf, jnp.zeros((bp - b, k1), xf.dtype)], axis=0)

        flops = 2 * bp * (k1 * n1 + n1 * n2 + n2 * n3)
        bytes_accessed = int(
            bp * k1 * xf.dtype.itemsize
            + sum(int(a.size) * a.dtype.itemsize
                  for a in (self.t1, self.t2, self.t3, self.b1, self.b2, self.b3))
            + bp * (n1 + n2 + n3) * 4)

        s1, s2, out = pl.pallas_call(
            functools.partial(_fused_encoder_kernel, compute_dtype=self.compute_dtype),
            out_shape=[jax.ShapeDtypeStruct((bp, n1), jnp.float32),
                       jax.ShapeDtypeStruct((bp, n2), jnp.float32),
                       jax.ShapeDtypeStruct((bp, n3), jnp.float32)],
            grid=(bp // tb,),
            in_specs=[pl.BlockSpec((tb, k1), lambda i: (i, 0)),   # x batch tile
                      pl.BlockSpec((k1, n1), lambda i: (0, 0)),   # packed conv1
                      pl.BlockSpec((1, n1), lambda i: (0, 0)),
                      pl.BlockSpec((n1, n2), lambda i: (0, 0)),   # packed conv2
                      pl.BlockSpec((1, n2), lambda i: (0, 0)),
                      pl.BlockSpec((n2, n3), lambda i: (0, 0)),   # packed last_conv
                      pl.BlockSpec((1, n3), lambda i: (0, 0))],
            out_specs=[pl.BlockSpec((tb, n1), lambda i: (i, 0)),  # skip1 (NCHW-flat)
                       pl.BlockSpec((tb, n2), lambda i: (i, 0)),  # skip2 (NCHW-flat)
                       pl.BlockSpec((tb, n3), lambda i: (i, 0))], # encoder output
            compiler_params=pltpu.CompilerParams(
                dimension_semantics=("parallel",)),               # megacore on v7x
            cost_estimate=pl.CostEstimate(flops=int(flops),
                                          transcendentals=int(bp * n3),
                                          bytes_accessed=bytes_accessed),
        )(xf, self.t1, self.b1, self.t2, self.b2, self.t3, self.b3)

        if bp != b:
            s1, s2, out = s1[:b], s2[:b], out[:b]
        (c1, h1, w1), (c2, h2, w2) = self._skip_chw
        return out, s1.reshape(b, c1, h1, w1), s2.reshape(b, c2, h2, w2)

    def __call__(self, x, return_skip=False):
        out, skip1, skip2 = self._fwd(x)
        if return_skip:
            return out, [skip1, skip2]     # skips NCHW, shallowest -> deepest (as in torch code)
        return out


# ---------------------------------------------------------------------------
# Deterministic parameter init (Conv2d + eval-mode BatchNorm2d folded in)
# ---------------------------------------------------------------------------
def _conv_bn_params(key, cout, cin, k):
    k1, k2, k3, k4, k5, k6 = jax.random.split(key, 6)
    w = 0.1 * jax.random.normal(k1, (cout, cin, k, k), jnp.float32)
    b = 0.1 * jax.random.normal(k2, (cout,), jnp.float32)
    gamma = 1.0 + 0.1 * jax.random.normal(k3, (cout,), jnp.float32)
    beta = 0.1 * jax.random.normal(k4, (cout,), jnp.float32)
    mean = 0.1 * jax.random.normal(k5, (cout,), jnp.float32)
    var = 1.0 + 0.1 * jax.random.uniform(k6, (cout,), jnp.float32)
    scale = gamma / jnp.sqrt(var + 1e-5)
    return w * scale[:, None, None, None], (b - mean) * scale + beta


def init_params(key, nc, nf, nh):
    k1, k2, k3 = jax.random.split(key, 3)
    return {
        "conv": [
            _conv_bn_params(k1, nf, nc, 4),              # 16x16 -> 8x8
            _conv_bn_params(k2, 2 * nf, nf, 4),          # 8x8   -> 4x4
        ],
        "last_conv": _conv_bn_params(k3, nh, 2 * nf, 4),  # 4x4 -> 1x1
    }


# ---------------------------------------------------------------------------
# Pure-JAX reference (lax.conv); compute_dtype mirrors the kernel's MXU operands
# ---------------------------------------------------------------------------
def _ref_forward(x, raw_params, nh, compute_dtype=jnp.float32):
    cd = compute_dtype
    skips = []
    h = x
    for (w, b) in raw_params["conv"]:
        h = jax.lax.conv_general_dilated(
            h.astype(cd), w.astype(cd), (2, 2), [(1, 1), (1, 1)],
            dimension_numbers=("NCHW", "OIHW", "NCHW"),
            preferred_element_type=jnp.float32) + b[None, :, None, None]
        h = jnp.where(h >= 0, h, 0.2 * h)
        skips.append(h)
    w, b = raw_params["last_conv"]
    h = jax.lax.conv_general_dilated(
        h.astype(cd), w.astype(cd), (1, 1), [(0, 0), (0, 0)],
        dimension_numbers=("NCHW", "OIHW", "NCHW"),
        preferred_element_type=jnp.float32) + b[None, :, None, None]
    return jnp.tanh(h).reshape(-1, nh), skips


if __name__ == "__main__":
    nc, nf, nh = 4, 8, 32
    hin = win = 16
    key = jax.random.PRNGKey(0)
    kx, kp = jax.random.split(key)
    x = jax.random.normal(kx, (2, nc, hin, win), jnp.float32)   # NCHW like PyTorch
    raw = init_params(kp, nc, nf, nh)

    ref_out, ref_skips = _ref_forward(x, raw, nh)

    # --- f32 MXU operands: tight correctness check against the lax reference ---
    enc_f32 = BaseEncoderPallas(raw, nh, in_hw=(hin, win), compute_dtype=jnp.float32)
    out32, skips32 = enc_f32(x, return_skip=True)
    out32 = jax.block_until_ready(out32)
    assert out32.shape == (2, nh)
    assert skips32[0].shape == (2, nf, 8, 8) and skips32[1].shape == (2, 2 * nf, 4, 4)
    assert jnp.allclose(out32, ref_out, atol=1e-3, rtol=1e-3), "f32 output mismatch"
    for s, rs in zip(skips32, ref_skips):
        assert jnp.allclose(s, rs, atol=1e-3, rtol=1e-3), "f32 skip mismatch"

    # --- bf16 MXU operands, f32 accumulation (the perf config for v6e/v7x) ---
    enc_bf16 = BaseEncoderPallas(raw, nh, in_hw=(hin, win), compute_dtype=jnp.bfloat16)
    out16, skips16 = enc_bf16(x, return_skip=True)
    out16 = jax.block_until_ready(out16)
    jax.block_until_ready(skips16)
    ref16_out, _ = _ref_forward(x, raw, nh, compute_dtype=jnp.bfloat16)
    assert out16.shape == (2, nh)
    assert jnp.allclose(out16, ref16_out, atol=1e-2, rtol=1e-2), "bf16 output mismatch"

    print("KERNEL_OK")
</pallas_src>

<mosaic_0001>
module attributes {stable_mosaic.version = 11 : i64} {
  func.func @_fused_encoder_kernel(%arg0: i32, %arg1: memref<2x1024xf32, #tpu.memory_space<vmem>>, %arg2: memref<1024x512xf32, #tpu.memory_space<vmem>>, %arg3: memref<1x512xf32, #tpu.memory_space<vmem>>, %arg4: memref<512x256xf32, #tpu.memory_space<vmem>>, %arg5: memref<1x256xf32, #tpu.memory_space<vmem>>, %arg6: memref<256x32xf32, #tpu.memory_space<vmem>>, %arg7: memref<1x32xf32, #tpu.memory_space<vmem>>, %arg8: memref<2x512xf32, #tpu.memory_space<vmem>>, %arg9: memref<2x256xf32, #tpu.memory_space<vmem>>, %arg10: memref<2x32xf32, #tpu.memory_space<vmem>>) attributes {dimension_semantics = [#tpu.dimension_semantics<parallel>], iteration_bounds = array<i64: 1>, scalar_prefetch = 0 : i64, scratch_operands = 0 : i64, tpu.core_type = #tpu.core_type<tc>, window_params = [{transform_indices = @transform_0, window_bounds = array<i64: 2, 1024>}, {pipeline_mode = #tpu.pipeline_mode<synchronous>, transform_indices = @transform_1, window_bounds = array<i64: 1024, 512>}, {pipeline_mode = #tpu.pipeline_mode<synchronous>, transform_indices = @transform_2, window_bounds = array<i64: 1, 512>}, {pipeline_mode = #tpu.pipeline_mode<synchronous>, transform_indices = @transform_3, window_bounds = array<i64: 512, 256>}, {pipeline_mode = #tpu.pipeline_mode<synchronous>, transform_indices = @transform_4, window_bounds = array<i64: 1, 256>}, {pipeline_mode = #tpu.pipeline_mode<synchronous>, transform_indices = @transform_5, window_bounds = array<i64: 256, 32>}, {pipeline_mode = #tpu.pipeline_mode<synchronous>, transform_indices = @transform_6, window_bounds = array<i64: 1, 32>}, {transform_indices = @transform_7, window_bounds = array<i64: 2, 512>}, {transform_indices = @transform_8, window_bounds = array<i64: 2, 256>}, {transform_indices = @transform_9, window_bounds = array<i64: 2, 32>}]} {
    %c0 = arith.constant 0 : index
    %c0_0 = arith.constant 0 : index
    %0 = vector.load %arg1[%c0, %c0_0] : memref<2x1024xf32, #tpu.memory_space<vmem>>, vector<2x1024xf32>
    %c0_1 = arith.constant 0 : index
    %c0_2 = arith.constant 0 : index
    %1 = vector.load %arg2[%c0_1, %c0_2] : memref<1024x512xf32, #tpu.memory_space<vmem>>, vector<1024x512xf32>
    %cst = arith.constant dense<0.000000e+00> : vector<2x512xf32>
    %2 = tpu.matmul %0, %1, %cst {dimension_numbers = #tpu.dot_dimension_numbers<[1], [0], [0], [1], [0, 0, 1, 1], [], []>} : vector<2x1024xf32>, vector<1024x512xf32>, vector<2x512xf32> -> vector<2x512xf32>
    %c0_3 = arith.constant 0 : index
    %c0_4 = arith.constant 0 : index
    %3 = vector.load %arg3[%c0_3, %c0_4] : memref<1x512xf32, #tpu.memory_space<vmem>>, vector<1x512xf32>
    %4 = vector.broadcast %3 : vector<1x512xf32> to vector<2x512xf32>
    %5 = arith.addf %2, %4 : vector<2x512xf32>
    %cst_5 = arith.constant 0.000000e+00 : f32
    %6 = vector.broadcast %cst_5 : f32 to vector<2x512xf32>
    %7 = arith.cmpf oge, %5, %6 : vector<2x512xf32>
    %cst_6 = arith.constant 2.000000e-01 : f32
    %8 = vector.broadcast %cst_6 : f32 to vector<2x512xf32>
    %9 = arith.mulf %8, %5 : vector<2x512xf32>
    %10 = arith.select %7, %5, %9 : vector<2x512xi1>, vector<2x512xf32>
    %c0_7 = arith.constant 0 : index
    %c0_8 = arith.constant 0 : index
    %11 = vector.load %arg8[%c0_7, %c0_8] : memref<2x512xf32, #tpu.memory_space<vmem>>, vector<2x512xf32>
    tpu.vector_store %arg8[%c0_7, %c0_8], %10 {strides = array<i32>} : memref<2x512xf32, #tpu.memory_space<vmem>>, vector<2x512xf32>,
    %c0_9 = arith.constant 0 : index
    %c0_10 = arith.constant 0 : index
    %12 = vector.load %arg4[%c0_9, %c0_10] : memref<512x256xf32, #tpu.memory_space<vmem>>, vector<512x256xf32>
    %cst_11 = arith.constant dense<0.000000e+00> : vector<2x256xf32>
    %13 = tpu.matmul %10, %12, %cst_11 {dimension_numbers = #tpu.dot_dimension_numbers<[1], [0], [0], [1], [0, 0, 1, 1], [], []>} : vector<2x512xf32>, vector<512x256xf32>, vector<2x256xf32> -> vector<2x256xf32>
    %c0_12 = arith.constant 0 : index
    %c0_13 = arith.constant 0 : index
    %14 = vector.load %arg5[%c0_12, %c0_13] : memref<1x256xf32, #tpu.memory_space<vmem>>, vector<1x256xf32>
    %15 = vector.broadcast %14 : vector<1x256xf32> to vector<2x256xf32>
    %16 = arith.addf %13, %15 : vector<2x256xf32>
    %cst_14 = arith.constant 0.000000e+00 : f32
    %17 = vector.broadcast %cst_14 : f32 to vector<2x256xf32>
    %18 = arith.cmpf oge, %16, %17 : vector<2x256xf32>
    %cst_15 = arith.constant 2.000000e-01 : f32
    %19 = vector.broadcast %cst_15 : f32 to vector<2x256xf32>
    %20 = arith.mulf %19, %16 : vector<2x256xf32>
    %21 = arith.select %18, %16, %20 : vector<2x256xi1>, vector<2x256xf32>
    %c0_16 = arith.constant 0 : index
    %c0_17 = arith.constant 0 : index
    %22 = vector.load %arg9[%c0_16, %c0_17] : memref<2x256xf32, #tpu.memory_space<vmem>>, vector<2x256xf32>
    tpu.vector_store %arg9[%c0_16, %c0_17], %21 {strides = array<i32>} : memref<2x256xf32, #tpu.memory_space<vmem>>, vector<2x256xf32>,
    %c0_18 = arith.constant 0 : index
    %c0_19 = arith.constant 0 : index
    %23 = vector.load %arg6[%c0_18, %c0_19] : memref<256x32xf32, #tpu.memory_space<vmem>>, vector<256x32xf32>
    %cst_20 = arith.constant dense<0.000000e+00> : vector<2x32xf32>
    %24 = tpu.matmul %21, %23, %cst_20 {dimension_numbers = #tpu.dot_dimension_numbers<[1], [0], [0], [1], [0, 0, 1, 1], [], []>} : vector<2x256xf32>, vector<256x32xf32>, vector<2x32xf32> -> vector<2x32xf32>
    %c0_21 = arith.constant 0 : index
    %c0_22 = arith.constant 0 : index
    %25 = vector.load %arg7[%c0_21, %c0_22] : memref<1x32xf32, #tpu.memory_space<vmem>>, vector<1x32xf32>
    %26 = vector.broadcast %25 : vector<1x32xf32> to vector<2x32xf32>
    %27 = arith.addf %24, %26 : vector<2x32xf32>
    %28 = math.tanh %27 : vector<2x32xf32>
    %c0_23 = arith.constant 0 : index
    %c0_24 = arith.constant 0 : index
    %29 = vector.load %arg10[%c0_23, %c0_24] : memref<2x32xf32, #tpu.memory_space<vmem>>, vector<2x32xf32>
    tpu.vector_store %arg10[%c0_23, %c0_24], %28 {strides = array<i32>} : memref<2x32xf32, #tpu.memory_space<vmem>>, vector<2x32xf32>,
    return
  }
  func.func @transform_0(%arg0: i32) -> (i32, i32) {
    %c0_i32 = arith.constant 0 : i32
    %c0_i32_0 = arith.constant 0 : i32
    return %arg0, %c0_i32 : i32, i32
  }
  func.func @transform_1(%arg0: i32) -> (i32, i32) {
    %c0_i32 = arith.constant 0 : i32
    %c0_i32_0 = arith.constant 0 : i32
    %c0_i32_1 = arith.constant 0 : i32
    return %c0_i32, %c0_i32_0 : i32, i32
  }
  func.func @transform_2(%arg0: i32) -> (i32, i32) {
    %c0_i32 = arith.constant 0 : i32
    %c0_i32_0 = arith.constant 0 : i32
    %c0_i32_1 = arith.constant 0 : i32
    return %c0_i32, %c0_i32_0 : i32, i32
  }
  func.func @transform_3(%arg0: i32) -> (i32, i32) {
    %c0_i32 = arith.constant 0 : i32
    %c0_i32_0 = arith.constant 0 : i32
    %c0_i32_1 = arith.constant 0 : i32
    return %c0_i32, %c0_i32_0 : i32, i32
  }
  func.func @transform_4(%arg0: i32) -> (i32, i32) {
    %c0_i32 = arith.constant 0 : i32
    %c0_i32_0 = arith.constant 0 : i32
    %c0_i32_1 = arith.constant 0 : i32
    return %c0_i32, %c0_i32_0 : i32, i32
  }
  func.func @transform_5(%arg0: i32) -> (i32, i32) {
    %c0_i32 = arith.constant 0 : i32
    %c0_i32_0 = arith.constant 0 : i32
    %c0_i32_1 = arith.constant 0 : i32
    return %c0_i32, %c0_i32_0 : i32, i32
  }
  func.func @transform_6(%arg0: i32) -> (i32, i32) {
    %c0_i32 = arith.constant 0 : i32
    %c0_i32_0 = arith.constant 0 : i32
    %c0_i32_1 = arith.constant 0 : i32
    return %c0_i32, %c0_i32_0 : i32, i32
  }
  func.func @transform_7(%arg0: i32) -> (i32, i32) {
    %c0_i32 = arith.constant 0 : i32
    %c0_i32_0 = arith.constant 0 : i32
    return %arg0, %c0_i32 : i32, i32
  }
  func.func @transform_8(%arg0: i32) -> (i32, i32) {
    %c0_i32 = arith.constant 0 : i32
    %c0_i32_0 = arith.constant 0 : i32
    return %arg0, %c0_i32 : i32, i32
  }
  func.func @transform_9(%arg0: i32) -> (i32, i32) {
    %c0_i32 = arith.constant 0 : i32
    %c0_i32_0 = arith.constant 0 : i32
    return %arg0, %c0_i32 : i32, i32
  }
}

</mosaic_0001>

<bundles_post_ra>
// kernel: _forward.1
= control target key start
LH: loop header
LB: loop body
LE: loop exit
PB: predicated region body
PF: predicated region fallthrough
CT: control target
= control target key end

     0   :  { %15 = vsyncpa [#allocation3], 0  ;;  %s2109_s0 = inlined_call_operand.vmem [shape: f32[2,1024], index: 0, kind: input, shape index: {}]   ;;  %s2110_s1 = inlined_call_operand.hbm [shape: f32[1024,512], index: 1, kind: input, shape index: {}]   ;;  %s2111_s2 = inlined_call_operand.hbm [shape: f32[1,512], index: 2, kind: input, shape index: {}]   ;;  %s2112_s3 = inlined_call_operand.hbm [shape: f32[512,256], index: 3, kind: input, shape index: {}]   ;;  %s2113_s4 = inlined_call_operand.hbm [shape: f32[1,256], index: 4, kind: input, shape index: {}]   ;;  %s2114_s5 = inlined_call_operand.hbm [shape: f32[256,32], index: 5, kind: input, shape index: {}]   ;;  %s2115_s6 = inlined_call_operand.hbm [shape: f32[1,32], index: 6, kind: input, shape index: {}]   ;;  %s2116_s7 = inlined_call_operand.vmem [shape: f32[2,512], index: 7, kind: output, shape index: {0}]   ;;  %s2117_s8 = inlined_call_operand.vmem [shape: f32[2,256], index: 8, kind: output, shape index: {1}]   ;;  %s2118_s9 = inlined_call_operand.hbm [shape: f32[2,32], index: 9, kind: output, shape index: {2}]  }
   0x1   :  { %16 = vsyncpa [#allocation6], 0 }
   0x2   :  { %17 = vsyncpa [#allocation9], 0 }
   0x3   :  { %18 = vsyncpa [#allocation12], 0 }
   0x4   :  { %19 = vsyncpa [#allocation4], 0  ;;  %s1932_s30 = smov [#allocation5]   ;;  %s1933_s11 = smov [#allocation8]  }
   0x5   :  { %s40_s10 = sshll.u32 %s1932_s30, 4  ;;  %s62_s12 = sshll.u32 %s1933_s11, 4  ;;  %s41_s10 = int_to_ptr.vmem [resolvable:$true] %s40_s10  ;;  %s63_s12 = int_to_ptr.vmem [resolvable:$true] %s62_s12 }
   0x6   :  { %s1790_s13 = scalar_lea.vmem %s41_s10, 64  ;;  %p1795_p1 = scmp.lt.s32.totalorder %s41_s10, %s41_s10 }
   0x7   :  { %p1791_p0 = scmp.ne.s32.totalorder %s41_s10, %s1790_s13  ;;  %p1796_p2 = scmp.lt.s32.totalorder %s1790_s13, %s1790_s13 }
   0x9   :  { %p1797_p3 = por %p1796_p2, %p1795_p1 }
   0xb   :  { %p1798_p4 = pnand %p1797_p3, %p1791_p0 }
   0xd   :  { %1801 = shalt.err (!%p1798_p4)
}
   0xe   :  { %43 = dma.hbm_to_vmem [thread:$0]  %s2111_s2, 64, %s41_s10, [#allocation6]  }
   0xf   :  { %s1810_s16 = scalar_lea.vmem %s63_s12, 32  ;;  %p1815_p6 = scmp.lt.s32.totalorder %s63_s12, %s63_s12 }
  0x10   :  { %p1811_p5 = scmp.ne.s32.totalorder %s63_s12, %s1810_s16  ;;  %p1816_p7 = scmp.lt.s32.totalorder %s1810_s16, %s1810_s16 }
  0x12   :  { %p1817_p8 = por %p1816_p7, %p1815_p6 }
  0x14   :  { %p1818_p9 = pnand %p1817_p8, %p1811_p5 }
  0x16   :  { %1821 = shalt.err (!%p1818_p9)
}
  0x17   :  { %65 = dma.hbm_to_vmem [thread:$0]  %s2113_s4, 32, %s63_s12, [#allocation9]  }
  0x18   :  { %s1934_s19 = smov [#allocation2]  }
  0x19   :  { %s27_s20 = sshll.u32 %s1934_s19, 4  ;;  %s28_s20 = int_to_ptr.vmem [resolvable:$true] %s27_s20 }
  0x1a   :  { %s1830_s21 = scalar_lea.vmem %s28_s20, 65536  ;;  %p1835_p11 = scmp.lt.s32.totalorder %s28_s20, %s28_s20 }
  0x1b   :  { %p1831_p10 = scmp.ne.s32.totalorder %s28_s20, %s1830_s21  ;;  %p1836_p12 = scmp.lt.s32.totalorder %s1830_s21, %s1830_s21 }
  0x1d   :  { %p1837_p13 = por %p1836_p12, %p1835_p11 }
  0x1f   :  { %p1838_p0 = pnand %p1837_p13, %p1831_p10 }
  0x21   :  { %1841 = shalt.err (!%p1838_p0)
}
  0x22   :  { %s1935_s2 = smov 512   ;;  %s1936_s22 = smov 32  }
  0x23   :  { %33 = dma.hbm_to_vmem [thread:$0]  %s2110_s1, 65536, %s28_s20, [#allocation3], %s1935_s2, %s1935_s2, %s1936_s22  }
  0x24   :  { %s1937_s25 = smov [#allocation7]  }
  0x25   :  { %s49_s26 = sshll.u32 %s1937_s25, 4  ;;  %s50_s26 = int_to_ptr.vmem [resolvable:$true] %s49_s26 }
  0x26   :  { %s1850_s4 = scalar_lea.vmem %s50_s26, 16384  ;;  %p1855_p2 = scmp.lt.s32.totalorder %s50_s26, %s50_s26 }
  0x27   :  { %p1851_p1 = scmp.ne.s32.totalorder %s50_s26, %s1850_s4  ;;  %p1856_p3 = scmp.lt.s32.totalorder %s1850_s4, %s1850_s4 }
  0x29   :  { %p1857_p4 = por %p1856_p3, %p1855_p2 }
  0x2b   :  { %p1858_p5 = pnand %p1857_p4, %p1851_p1 }
  0x2d   :  { %1861 = shalt.err (!%p1858_p5)
}
  0x2e   :  { %s1938_s27 = smov 256   ;;  %s1939_s28 = smov 16  }
  0x2f   :  { %55 = dma.hbm_to_vmem [thread:$0]  %s2112_s3, 16384, %s50_s26, [#allocation6], %s1938_s27, %s1938_s27, %s1939_s28  }
  0x30   :  { %s1940_s10 = smov [#allocation10]  }
  0x31   :  { %s71_s11 = sshll.u32 %s1940_s10, 4  ;;  %s72_s11 = int_to_ptr.vmem [resolvable:$true] %s71_s11 }
  0x32   :  { %s1870_s1 = scalar_lea.vmem %s72_s11, 4096  ;;  %p1875_p7 = scmp.lt.s32.totalorder %s72_s11, %s72_s11 }
  0x33   :  { %p1871_p6 = scmp.ne.s32.totalorder %s72_s11, %s1870_s1  ;;  %p1876_p8 = scmp.lt.s32.totalorder %s1870_s1, %s1870_s1 }
  0x35   :  { %p1877_p9 = por %p1876_p8, %p1875_p7 }
  0x37   :  { %p1878_p10 = pnand %p1877_p9, %p1871_p6 }
  0x39   :  { %1881 = shalt.err (!%p1878_p10)
}
  0x3a   :  { %s1941_s12 = smov 128   ;;  %s1942_s13 = smov 8  }
  0x3b   :  { %77 = dma.hbm_to_vmem [thread:$0]  %s2114_s5, 4096, %s72_s11, [#allocation9], %s1941_s12, %s1941_s12, %s1942_s13  }
  0x3c   :  { %s1943_s16 = smov [#allocation11]  }
  0x3d   :  { %s84_s17 = sshll.u32 %s1943_s16, 4  ;;  %s85_s17 = int_to_ptr.vmem [resolvable:$true] %s84_s17 }
  0x3e   :  { %s1890_s3 = scalar_lea.vmem %s85_s17, 16  ;;  %s1894_s18 = scalar_lea.vmem %s85_s17, 32 }
  0x3f   :  { %p1891_p11 = scmp.ne.s32.totalorder %s85_s17, %s1890_s3  ;;  %p1895_p12 = scmp.lt.s32.totalorder %s85_s17, %s85_s17 }
  0x40   :  { %p1896_p13 = scmp.lt.s32.totalorder %s1894_s18, %s1890_s3 }
  0x42   :  { %p1897_p0 = por %p1896_p13, %p1895_p12 }
  0x44   :  { %p1898_p1 = pnand %p1897_p0, %p1891_p11 }
  0x46   :  { %1901 = shalt.err (!%p1898_p1)
}
  0x47   :  { %87 = dma.hbm_to_vmem [thread:$0]  %s2115_s6, 16, %s85_s17, [#allocation12]  }
  0x48   :  { %1922 = dma.done.wait [#allocation3], 65536  }
  0x49   :  { %1923 = vsyncadd [#allocation3], 4294901760 }
  0x4a   :  { %1924 = dma.done.wait [#allocation6], 16448  }
  0x4b   :  { %1925 = vsyncadd [#allocation6], 4294950848 }
  0x4c   :  { %1926 = dma.done.wait [#allocation9], 4128  }
  0x4d   :  { %1927 = vsyncadd [#allocation9], 4294963168 }
  0x4e   :  { %1928 = dma.done.wait [#allocation12], 16  }
  0x4f   :  { %1929 = vsyncadd [#allocation12], 4294967280  ;;  %v169_v0 = vld [vmem:[#allocation2 + $0x1e8] sm:$0xff]  ;;  %v168_v2 = vld [vmem:[#allocation2 + $0x1e0] sm:$0xff]  ;;  %s1945_s24 = smov [#allocation13]   ;;  %vm1699_vm6 = vcmask 254976  }
  0x50   :  { %v297_v1 = vld [vmem:[#allocation2 + $0x5e8] sm:$0xff]  ;;  %686 = vmatprep.subr.mxu0 %v169_v0  ;;  %v296_v3 = vld [vmem:[#allocation2 + $0x5e0] sm:$0xff]  ;;  %s1711_s25 = sshll.u32 %s1945_s24, 4  ;;  %s1712_s25 = int_to_ptr.vmem [resolvable:$true] %s1711_s25 }
  0x51   :  { %757 = vmatprep.subr.mxu1 %v297_v1  ;;  %v165_v4 = vld [vmem:[#allocation2 + $0x1c8] sm:$0xff]  ;;  %687 = vmatpush1.msra.mxu0 %v168_v2  ;;  %v164_v6 = vld [vmem:[#allocation2 + $0x1c0] sm:$0xff]  ;;  %s1902_s26 = scalar_lea.vmem %s1712_s25, 32  ;;  %p1907_p3 = scmp.lt.s32.totalorder %s1712_s25, %s1712_s25 }
  0x52   :  { %v293_v5 = vld [vmem:[#allocation2 + $0x5c8] sm:$0xff]  ;;  %758 = vmatpush1.msra.mxu1 %v296_v3  ;;  %v292_v7 = vld [vmem:[#allocation2 + $0x5c0] sm:$0xff]  ;;  %688 = vmatprep.subr.mxu0 %v165_v4  ;;  %p1903_p2 = scmp.ne.s32.totalorder %s1712_s25, %s1902_s26  ;;  %p1908_p4 = scmp.lt.s32.totalorder %s1902_s26, %s1902_s26 }
  0x53   :  { %v161_v8 = vld [vmem:[#allocation2 + $0x1a8] sm:$0xff]  ;;  %759 = vmatprep.subr.mxu1 %v293_v5  ;;  %v160_v10 = vld [vmem:[#allocation2 + $0x1a0] sm:$0xff]  ;;  %689 = vmatpush1.msra.mxu0 %v164_v6 }
  0x54   :  { %v289_v9 = vld [vmem:[#allocation2 + $0x5a8] sm:$0xff]  ;;  %v288_v11 = vld [vmem:[#allocation2 + $0x5a0] sm:$0xff]  ;;  %760 = vmatpush1.msra.mxu1 %v292_v7  ;;  %690 = vmatprep.subr.mxu0 %v161_v8  ;;  %p1909_p5 = por %p1908_p4, %p1907_p3 }
  0x55   :  { %v157_v12 = vld [vmem:[#allocation2 + $0x188] sm:$0xff]  ;;  %761 = vmatprep.subr.mxu1 %v289_v9  ;;  %v156_v14 = vld [vmem:[#allocation2 + $0x180] sm:$0xff]  ;;  %691 = vmatpush1.msra.mxu0 %v160_v10 }
  0x56   :  { %v285_v13 = vld [vmem:[#allocation2 + $0x588] sm:$0xff]  ;;  %v284_v15 = vld [vmem:[#allocation2 + $0x580] sm:$0xff]  ;;  %762 = vmatpush1.msra.mxu1 %v288_v11  ;;  %692 = vmatprep.subr.mxu0 %v157_v12  ;;  %p1910_p6 = pnand %p1909_p5, %p1903_p2 }
  0x57   :  { %v153_v16 = vld [vmem:[#allocation2 + $0x168] sm:$0xff]  ;;  %763 = vmatprep.subr.mxu1 %v285_v13  ;;  %v152_v18 = vld [vmem:[#allocation2 + $0x160] sm:$0xff]  ;;  %693 = vmatpush1.msra.mxu0 %v156_v14 }
  0x58   :  { %v281_v17 = vld [vmem:[#allocation2 + $0x568] sm:$0xff]  ;;  %v280_v19 = vld [vmem:[#allocation2 + $0x560] sm:$0xff]  ;;  %764 = vmatpush1.msra.mxu1 %v284_v15  ;;  %694 = vmatprep.subr.mxu0 %v153_v16 }
  0x59   :  { %v149_v20 = vld [vmem:[#allocation2 + $0x148] sm:$0xff]  ;;  %765 = vmatprep.subr.mxu1 %v281_v17  ;;  %v148_v22 = vld [vmem:[#allocation2 + $0x140] sm:$0xff]  ;;  %695 = vmatpush1.msra.mxu0 %v152_v18 }
  0x5a   :  { %v277_v21 = vld [vmem:[#allocation2 + $0x548] sm:$0xff]  ;;  %v276_v23 = vld [vmem:[#allocation2 + $0x540] sm:$0xff]  ;;  %766 = vmatpush1.msra.mxu1 %v280_v19  ;;  %696 = vmatprep.subr.mxu0 %v149_v20 }
  0x5b   :  { %v145_v24 = vld [vmem:[#allocation2 + $0x128] sm:$0xff]  ;;  %767 = vmatprep.subr.mxu1 %v277_v21  ;;  %v144_v26 = vld [vmem:[#allocation2 + $0x120] sm:$0xff]  ;;  %697 = vmatpush1.msra.mxu0 %v148_v22 }
  0x5c   :  { %v273_v25 = vld [vmem:[#allocation2 + $0x528] sm:$0xff]  ;;  %v272_v27 = vld [vmem:[#allocation2 + $0x520] sm:$0xff]  ;;  %768 = vmatpush1.msra.mxu1 %v276_v23  ;;  %698 = vmatprep.subr.mxu0 %v145_v24 }
  0x5d   :  { %v141_v28 = vld [vmem:[#allocation2 + $0x108] sm:$0xff]  ;;  %769 = vmatprep.subr.mxu1 %v273_v25  ;;  %v140_v30 = vld [vmem:[#allocation2 + $0x100] sm:$0xff]  ;;  %699 = vmatpush1.msra.mxu0 %v144_v26 }
  0x5e   :  { %v269_v29 = vld [vmem:[#allocation2 + $0x508] sm:$0xff]  ;;  %v268_v31 = vld [vmem:[#allocation2 + $0x500] sm:$0xff]  ;;  %770 = vmatpush1.msra.mxu1 %v272_v27  ;;  %700 = vmatprep.subr.mxu0 %v141_v28 }
  0x5f   :  { %v137_v32 = vld [vmem:[#allocation2 + $0xe8] sm:$0xff]  ;;  %771 = vmatprep.subr.mxu1 %v269_v29  ;;  %v136_v34 = vld [vmem:[#allocation2 + $0xe0] sm:$0xff]  ;;  %701 = vmatpush1.msra.mxu0 %v140_v30  ;;  %v622_v30 = vlaneseq }
  0x60   :  { %v265_v33 = vld [vmem:[#allocation2 + $0x4e8] sm:$0xff]  ;;  %v264_v35 = vld [vmem:[#allocation2 + $0x4e0] sm:$0xff]  ;;  %772 = vmatpush1.msra.mxu1 %v268_v31  ;;  %702 = vmatprep.subr.mxu0 %v137_v32  ;;  %v1944_v31 = vmov 1983009808  }
  0x61   :  { %v133_v36 = vld [vmem:[#allocation2 + $0xc8] sm:$0xff]  ;;  %773 = vmatprep.subr.mxu1 %v265_v33  ;;  %v132_v38 = vld [vmem:[#allocation2 + $0xc0] sm:$0xff]  ;;  %703 = vmatpush1.msra.mxu0 %v136_v34  ;;  %v646_v32 = vunpack.c.l.s4 %v1944_v31 }
  0x62   :  { %v261_v37 = vld [vmem:[#allocation2 + $0x4c8] sm:$0xff]  ;;  %v260_v39 = vld [vmem:[#allocation2 + $0x4c0] sm:$0xff]  ;;  %774 = vmatpush1.msra.mxu1 %v264_v35  ;;  %704 = vmatprep.subr.mxu0 %v133_v36 }
  0x63   :  { %v129_v40 = vld [vmem:[#allocation2 + $0xa8] sm:$0xff]  ;;  %775 = vmatprep.subr.mxu1 %v261_v37  ;;  %v128_v42 = vld [vmem:[#allocation2 + $0xa0] sm:$0xff]  ;;  %705 = vmatpush1.msra.mxu0 %v132_v38 }
  0x64   :  { %v257_v41 = vld [vmem:[#allocation2 + $0x4a8] sm:$0xff]  ;;  %v256_v43 = vld [vmem:[#allocation2 + $0x4a0] sm:$0xff]  ;;  %776 = vmatpush1.msra.mxu1 %v260_v39  ;;  %706 = vmatprep.subr.mxu0 %v129_v40 }
  0x65   :  { %v125_v44 = vld [vmem:[#allocation2 + $0x88] sm:$0xff]  ;;  %777 = vmatprep.subr.mxu1 %v257_v41  ;;  %v124_v46 = vld [vmem:[#allocation2 + $0x80] sm:$0xff]  ;;  %707 = vmatpush1.msra.mxu0 %v128_v42  ;;  %v2014_v41 = vshrl.u32 %v622_v30, 7  ;;  %v647_v42 = vunpack.c.0.s8 %v646_v32 }
  0x66   :  { %v253_v45 = vld [vmem:[#allocation2 + $0x488] sm:$0xff]  ;;  %v252_v47 = vld [vmem:[#allocation2 + $0x480] sm:$0xff]  ;;  %778 = vmatpush1.msra.mxu1 %v256_v43  ;;  %708 = vmatprep.subr.mxu0 %v125_v44 }
  0x67   :  { %v121_v48 = vld [vmem:[#allocation2 + $0x68] sm:$0xff]  ;;  %779 = vmatprep.subr.mxu1 %v253_v45  ;;  %v120_v50 = vld [vmem:[#allocation2 + $0x60] sm:$0xff]  ;;  %709 = vmatpush1.msra.mxu0 %v124_v46 }
  0x68   :  { %v249_v49 = vld [vmem:[#allocation2 + $0x468] sm:$0xff]  ;;  %v248_v51 = vld [vmem:[#allocation2 + $0x460] sm:$0xff]  ;;  %780 = vmatpush1.msra.mxu1 %v252_v47  ;;  %710 = vmatprep.subr.mxu0 %v121_v48 }
  0x69   :  { %v117_v52 = vld [vmem:[#allocation2 + $0x48] sm:$0xff]  ;;  %781 = vmatprep.subr.mxu1 %v249_v49  ;;  %v116_v54 = vld [vmem:[#allocation2 + $0x40] sm:$0xff]  ;;  %711 = vmatpush1.msra.mxu0 %v120_v50 }
  0x6a   :  { %v245_v53 = vld [vmem:[#allocation2 + $0x448] sm:$0xff]  ;;  %v244_v55 = vld [vmem:[#allocation2 + $0x440] sm:$0xff]  ;;  %782 = vmatpush1.msra.mxu1 %v248_v51  ;;  %712 = vmatprep.subr.mxu0 %v117_v52  ;;  %v2020_v52 = vsub.s32 %v647_v42, %v2014_v41 }
  0x6b   :  { %v113_v56 = vld [vmem:[#allocation2 + $0x28] sm:$0xff]  ;;  %783 = vmatprep.subr.mxu1 %v245_v53  ;;  %v112_v58 = vld [vmem:[#allocation2 + $0x20] sm:$0xff]  ;;  %713 = vmatpush1.msra.mxu0 %v116_v54 }
  0x6c   :  { %v241_v57 = vld [vmem:[#allocation2 + $0x428] sm:$0xff]  ;;  %v240_v59 = vld [vmem:[#allocation2 + $0x420] sm:$0xff]  ;;  %784 = vmatpush1.msra.mxu1 %v244_v55  ;;  %714 = vmatprep.subr.mxu0 %v113_v56 }
  0x6d   :  { %v109_v60 = vld [vmem:[#allocation2 + $0x8] sm:$0xff]  ;;  %785 = vmatprep.subr.mxu1 %v241_v57  ;;  %v108_v62 = vld [vmem:[#allocation2] sm:$0xff]  ;;  %715 = vmatpush1.msra.mxu0 %v112_v58 }
  0x6e   :  { %v237_v61 = vld [vmem:[#allocation2 + $0x408] sm:$0xff]  ;;  %v236_v63 = vld [vmem:[#allocation2 + $0x400] sm:$0xff]  ;;  %786 = vmatpush1.msra.mxu1 %v240_v59  ;;  %716 = vmatprep.subr.mxu0 %v109_v60 }
  0x6f   :  { %v233_v0 = vld [vmem:[#allocation2 + $0x3e8] sm:$0xff]  ;;  %787 = vmatprep.subr.mxu1 %v237_v61  ;;  %v232_v2 = vld [vmem:[#allocation2 + $0x3e0] sm:$0xff]  ;;  %717 = vmatpush1.msra.mxu0 %v108_v62 }
  0x70   :  { %v361_v1 = vld [vmem:[#allocation2 + $0x7e8] sm:$0xff]  ;;  %v360_v3 = vld [vmem:[#allocation2 + $0x7e0] sm:$0xff]  ;;  %788 = vmatpush1.msra.mxu1 %v236_v63  ;;  %718 = vmatprep.subr.mxu0 %v233_v0 }
  0x71   :  { %v229_v4 = vld [vmem:[#allocation2 + $0x3c8] sm:$0xff]  ;;  %789 = vmatprep.subr.mxu1 %v361_v1  ;;  %v228_v6 = vld [vmem:[#allocation2 + $0x3c0] sm:$0xff]  ;;  %719 = vmatpush2.msra.mxu0 %v232_v2 }
  0x72   :  { %v357_v5 = vld [vmem:[#allocation2 + $0x7c8] sm:$0xff]  ;;  %v356_v7 = vld [vmem:[#allocation2 + $0x7c0] sm:$0xff]  ;;  %790 = vmatpush2.msra.mxu1 %v360_v3  ;;  %720 = vmatprep.subr.mxu0 %v229_v4 }
  0x73   :  { %v225_v8 = vld [vmem:[#allocation2 + $0x3a8] sm:$0xff]  ;;  %791 = vmatprep.subr.mxu1 %v357_v5  ;;  %v224_v10 = vld [vmem:[#allocation2 + $0x3a0] sm:$0xff]  ;;  %721 = vmatpush2.msra.mxu0 %v228_v6 }
  0x74   :  { %v353_v9 = vld [vmem:[#allocation2 + $0x7a8] sm:$0xff]  ;;  %v352_v11 = vld [vmem:[#allocation2 + $0x7a0] sm:$0xff]  ;;  %792 = vmatpush2.msra.mxu1 %v356_v7  ;;  %722 = vmatprep.subr.mxu0 %v225_v8 }
  0x75   :  { %v221_v12 = vld [vmem:[#allocation2 + $0x388] sm:$0xff]  ;;  %793 = vmatprep.subr.mxu1 %v353_v9  ;;  %v220_v14 = vld [vmem:[#allocation2 + $0x380] sm:$0xff]  ;;  %723 = vmatpush2.msra.mxu0 %v224_v10 }
  0x76   :  { %v349_v13 = vld [vmem:[#allocation2 + $0x788] sm:$0xff]  ;;  %v348_v15 = vld [vmem:[#allocation2 + $0x780] sm:$0xff]  ;;  %794 = vmatpush2.msra.mxu1 %v352_v11  ;;  %724 = vmatprep.subr.mxu0 %v221_v12 }
  0x77   :  { %v217_v16 = vld [vmem:[#allocation2 + $0x368] sm:$0xff]  ;;  %795 = vmatprep.subr.mxu1 %v349_v13  ;;  %v216_v18 = vld [vmem:[#allocation2 + $0x360] sm:$0xff]  ;;  %725 = vmatpush2.msra.mxu0 %v220_v14 }
  0x78   :  { %v345_v17 = vld [vmem:[#allocation2 + $0x768] sm:$0xff]  ;;  %v344_v19 = vld [vmem:[#allocation2 + $0x760] sm:$0xff]  ;;  %796 = vmatpush2.msra.mxu1 %v348_v15  ;;  %726 = vmatprep.subr.mxu0 %v217_v16 }
  0x79   :  { %v213_v20 = vld [vmem:[#allocation2 + $0x348] sm:$0xff]  ;;  %797 = vmatprep.subr.mxu1 %v345_v17  ;;  %v212_v22 = vld [vmem:[#allocation2 + $0x340] sm:$0xff]  ;;  %727 = vmatpush2.msra.mxu0 %v216_v18 }
  0x7a   :  { %v341_v21 = vld [vmem:[#allocation2 + $0x748] sm:$0xff]  ;;  %v340_v23 = vld [vmem:[#allocation2 + $0x740] sm:$0xff]  ;;  %798 = vmatpush2.msra.mxu1 %v344_v19  ;;  %728 = vmatprep.subr.mxu0 %v213_v20 }
  0x7b   :  { %v209_v24 = vld [vmem:[#allocation2 + $0x328] sm:$0xff]  ;;  %799 = vmatprep.subr.mxu1 %v341_v21  ;;  %v208_v26 = vld [vmem:[#allocation2 + $0x320] sm:$0xff]  ;;  %729 = vmatpush2.msra.mxu0 %v212_v22 }
  0x7c   :  { %v337_v25 = vld [vmem:[#allocation2 + $0x728] sm:$0xff]  ;;  %v336_v27 = vld [vmem:[#allocation2 + $0x720] sm:$0xff]  ;;  %800 = vmatpush2.msra.mxu1 %v340_v23  ;;  %730 = vmatprep.subr.mxu0 %v209_v24 }
  0x7d   :  { %v205_v28 = vld [vmem:[#allocation2 + $0x308] sm:$0xff]  ;;  %801 = vmatprep.subr.mxu1 %v337_v25  ;;  %v204_v33 = vld [vmem:[#allocation2 + $0x300] sm:$0xff]  ;;  %731 = vmatpush2.msra.mxu0 %v208_v26 }
  0x7e   :  { %v333_v29 = vld [vmem:[#allocation2 + $0x708] sm:$0xff]  ;;  %v332_v34 = vld [vmem:[#allocation2 + $0x700] sm:$0xff]  ;;  %802 = vmatpush2.msra.mxu1 %v336_v27  ;;  %732 = vmatprep.subr.mxu0 %v205_v28 }
  0x7f   :  { %v201_v35 = vld [vmem:[#allocation2 + $0x2e8] sm:$0xff]  ;;  %803 = vmatprep.subr.mxu1 %v333_v29  ;;  %v200_v37 = vld [vmem:[#allocation2 + $0x2e0] sm:$0xff]  ;;  %733 = vmatpush2.msra.mxu0 %v204_v33 }
  0x80   :  { %v329_v36 = vld [vmem:[#allocation2 + $0x6e8] sm:$0xff]  ;;  %v328_v38 = vld [vmem:[#allocation2 + $0x6e0] sm:$0xff]  ;;  %804 = vmatpush2.msra.mxu1 %v332_v34  ;;  %734 = vmatprep.subr.mxu0 %v201_v35 }
  0x81   :  { %v197_v39 = vld [vmem:[#allocation2 + $0x2c8] sm:$0xff]  ;;  %805 = vmatprep.subr.mxu1 %v329_v36  ;;  %v196_v43 = vld [vmem:[#allocation2 + $0x2c0] sm:$0xff]  ;;  %735 = vmatpush2.msra.mxu0 %v200_v37 }
  0x82   :  { %v325_v40 = vld [vmem:[#allocation2 + $0x6c8] sm:$0xff]  ;;  %v324_v44 = vld [vmem:[#allocation2 + $0x6c0] sm:$0xff]  ;;  %806 = vmatpush2.msra.mxu1 %v328_v38  ;;  %736 = vmatprep.subr.mxu0 %v197_v39 }
  0x83   :  { %v193_v45 = vld [vmem:[#allocation2 + $0x2a8] sm:$0xff]  ;;  %807 = vmatprep.subr.mxu1 %v325_v40  ;;  %v192_v47 = vld [vmem:[#allocation2 + $0x2a0] sm:$0xff]  ;;  %737 = vmatpush2.msra.mxu0 %v196_v43 }
  0x84   :  { %v321_v46 = vld [vmem:[#allocation2 + $0x6a8] sm:$0xff]  ;;  %v320_v48 = vld [vmem:[#allocation2 + $0x6a0] sm:$0xff]  ;;  %808 = vmatpush2.msra.mxu1 %v324_v44  ;;  %738 = vmatprep.subr.mxu0 %v193_v45 }
  0x85   :  { %v106_v49 = vld [vmem:[%s2109_s0] sm:$0xff]  ;;  %v189_v50 = vld [vmem:[#allocation2 + $0x288] sm:$0xff]  ;;  %809 = vmatprep.subr.mxu1 %v321_v46  ;;  %739 = vmatpush2.msra.mxu0 %v192_v47 }
  0x86   :  { %v317_v51 = vld [vmem:[#allocation2 + $0x688] sm:$0xff]  ;;  %v188_v53 = vld [vmem:[#allocation2 + $0x280] sm:$0xff]  ;;  %810 = vmatpush2.msra.mxu1 %v320_v48  ;;  %v644_v57 = vcombine.high %v106_v49, %v106_v49  ;;  %740 = vmatprep.subr.mxu0 %v189_v50  ;;  %v2023_v62 = vrot.slane %v106_v49, %v2020_v52 }
  0x87   :  { %v316_v54 = vld [vmem:[#allocation2 + $0x680] sm:$0xff]  ;;  %v185_v55 = vld [vmem:[#allocation2 + $0x268] sm:$0xff]  ;;  %811 = vmatprep.subr.mxu1 %v317_v51  ;;  %741 = vmatpush2.msra.mxu0 %v188_v53 }
  0x88   :  { %v313_v56 = vld [vmem:[#allocation2 + $0x668] sm:$0xff]  ;;  %v184_v58 = vld [vmem:[#allocation2 + $0x260] sm:$0xff]  ;;  %812 = vmatpush2.msra.mxu1 %v316_v54  ;;  %742 = vmatprep.subr.mxu0 %v185_v55  ;;  %v2026_v3 = vrot.slane %v644_v57, %v2020_v52  ;;  %v2030_v8 = vcombine.high %v2023_v62, %v2023_v62 }
  0x89   :  { %v312_v59 = vld [vmem:[#allocation2 + $0x660] sm:$0xff]  ;;  %v181_v60 = vld [vmem:[#allocation2 + $0x248] sm:$0xff]  ;;  %813 = vmatprep.subr.mxu1 %v313_v56  ;;  %743 = vmatpush2.msra.mxu0 %v184_v58 }
  0x8a   :  { %v309_v61 = vld [vmem:[#allocation2 + $0x648] sm:$0xff]  ;;  %v180_v63 = vld [vmem:[#allocation2 + $0x240] sm:$0xff]  ;;  %814 = vmatpush2.msra.mxu1 %v312_v59  ;;  %744 = vmatprep.subr.mxu0 %v181_v60  ;;  %v2034_v11 = vcombine.high %v2026_v3, %v2026_v3 }
  0x8b   :  { %v308_v0 = vld [vmem:[#allocation2 + $0x640] sm:$0xff]  ;;  %v177_v1 = vld [vmem:[#allocation2 + $0x228] sm:$0xff]  ;;  %815 = vmatprep.subr.mxu1 %v309_v61  ;;  %745 = vmatpush2.msra.mxu0 %v180_v63 }
  0x8c   :  { %v305_v2 = vld [vmem:[#allocation2 + $0x628] sm:$0xff]  ;;  %v176_v4 = vld [vmem:[#allocation2 + $0x220] sm:$0xff]  ;;  %816 = vmatpush2.msra.mxu1 %v308_v0  ;;  %746 = vmatprep.subr.mxu0 %v177_v1 }
  0x8d   :  { %v304_v5 = vld [vmem:[#allocation2 + $0x620] sm:$0xff]  ;;  %v173_v6 = vld [vmem:[#allocation2 + $0x208] sm:$0xff]  ;;  %817 = vmatprep.subr.mxu1 %v305_v2  ;;  %747 = vmatpush2.msra.mxu0 %v176_v4 }
  0x8e   :  { %v301_v7 = vld [vmem:[#allocation2 + $0x608] sm:$0xff]  ;;  %v172_v9 = vld [vmem:[#allocation2 + $0x200] sm:$0xff]  ;;  %818 = vmatpush2.msra.mxu1 %v304_v5  ;;  %748 = vmatprep.subr.mxu0 %v173_v6 }
  0x8f   :  { %v300_v10 = vld [vmem:[#allocation2 + $0x600] sm:$0xff]  ;;  %819 = vmatprep.subr.mxu1 %v301_v7  ;;  %v425_v12 = vld [vmem:[#allocation2 + $0x9e8] sm:$0xff]  ;;  %749 = vmatpush2.msra.mxu0 %v172_v9 }
  0x90   :  { %750 = vmatprep.mubr.f32.mxu0 %v2030_v8  ;;  %v553_v13 = vld [vmem:[#allocation2 + $0xde8] sm:$0xff]  ;;  %820 = vmatpush2.msra.mxu1 %v300_v10  ;;  %v424_v14 = vld [vmem:[#allocation2 + $0x9e0] sm:$0xff] }
  0x91   :  { %751 = vmatmul.mubr.f32.vlgmr.msra.gmra.mxu0 %v2023_v62  ;;  %v552_v15 = vld [vmem:[#allocation2 + $0xde0] sm:$0xff]  ;;  %821 = vmatprep.mubr.f32.mxu1 %v2034_v11  ;;  %v421_v16 = vld [vmem:[#allocation2 + $0x9c8] sm:$0xff] }
  0x92   :  { %828 = vmatprep.subr.mxu0 %v425_v12  ;;  %v549_v17 = vld [vmem:[#allocation2 + $0xdc8] sm:$0xff]  ;;  %899 = vmatprep.subr.mxu1 %v553_v13  ;;  %v420_v18 = vld [vmem:[#allocation2 + $0x9c0] sm:$0xff] }
  0x93   :  { %822 = vmatmul.mubr.f32.vlgmr.msra.gmra.mxu1 %v2026_v3  ;;  %v548_v19 = vld [vmem:[#allocation2 + $0xdc0] sm:$0xff]  ;;  %829 = vmatpush1.msra.mxu0 %v424_v14  ;;  %v417_v20 = vld [vmem:[#allocation2 + $0x9a8] sm:$0xff] }
  0x94   :  { %900 = vmatpush1.msra.mxu1 %v552_v15  ;;  %v545_v21 = vld [vmem:[#allocation2 + $0xda8] sm:$0xff]  ;;  %830 = vmatprep.subr.mxu0 %v421_v16  ;;  %v416_v22 = vld [vmem:[#allocation2 + $0x9a0] sm:$0xff] }
  0x95   :  { %901 = vmatprep.subr.mxu1 %v549_v17  ;;  %v544_v23 = vld [vmem:[#allocation2 + $0xda0] sm:$0xff]  ;;  %831 = vmatpush1.msra.mxu0 %v420_v18  ;;  %v413_v24 = vld [vmem:[#allocation2 + $0x988] sm:$0xff] }
  0x96   :  { %902 = vmatpush1.msra.mxu1 %v548_v19  ;;  %v541_v25 = vld [vmem:[#allocation2 + $0xd88] sm:$0xff]  ;;  %832 = vmatprep.subr.mxu0 %v417_v20  ;;  %v412_v26 = vld [vmem:[#allocation2 + $0x980] sm:$0xff] }
  0x97   :  { %903 = vmatprep.subr.mxu1 %v545_v21  ;;  %v540_v27 = vld [vmem:[#allocation2 + $0xd80] sm:$0xff]  ;;  %833 = vmatpush1.msra.mxu0 %v416_v22  ;;  %v409_v28 = vld [vmem:[#allocation2 + $0x968] sm:$0xff] }
  0x98   :  { %904 = vmatpush1.msra.mxu1 %v544_v23  ;;  %v537_v29 = vld [vmem:[#allocation2 + $0xd68] sm:$0xff]  ;;  %834 = vmatprep.subr.mxu0 %v413_v24  ;;  %v408_v30 = vld [vmem:[#allocation2 + $0x960] sm:$0xff] }
  0x99   :  { %905 = vmatprep.subr.mxu1 %v541_v25  ;;  %v536_v31 = vld [vmem:[#allocation2 + $0xd60] sm:$0xff]  ;;  %835 = vmatpush1.msra.mxu0 %v412_v26  ;;  %v405_v32 = vld [vmem:[#allocation2 + $0x948] sm:$0xff] }
  0x9a   :  { %906 = vmatpush1.msra.mxu1 %v540_v27  ;;  %v533_v33 = vld [vmem:[#allocation2 + $0xd48] sm:$0xff]  ;;  %836 = vmatprep.subr.mxu0 %v409_v28  ;;  %v404_v34 = vld [vmem:[#allocation2 + $0x940] sm:$0xff] }
  0x9b   :  { %907 = vmatprep.subr.mxu1 %v537_v29  ;;  %v532_v35 = vld [vmem:[#allocation2 + $0xd40] sm:$0xff]  ;;  %837 = vmatpush1.msra.mxu0 %v408_v30  ;;  %v401_v36 = vld [vmem:[#allocation2 + $0x928] sm:$0xff] }
  0x9c   :  { %908 = vmatpush1.msra.mxu1 %v536_v31  ;;  %v529_v37 = vld [vmem:[#allocation2 + $0xd28] sm:$0xff]  ;;  %838 = vmatprep.subr.mxu0 %v405_v32  ;;  %v400_v38 = vld [vmem:[#allocation2 + $0x920] sm:$0xff] }
  0x9d   :  { %909 = vmatprep.subr.mxu1 %v533_v33  ;;  %v528_v39 = vld [vmem:[#allocation2 + $0xd20] sm:$0xff]  ;;  %839 = vmatpush1.msra.mxu0 %v404_v34  ;;  %v397_v40 = vld [vmem:[#allocation2 + $0x908] sm:$0xff] }
  0x9e   :  { %910 = vmatpush1.msra.mxu1 %v532_v35  ;;  %v525_v42 = vld [vmem:[#allocation2 + $0xd08] sm:$0xff]  ;;  %840 = vmatprep.subr.mxu0 %v401_v36  ;;  %v396_v43 = vld [vmem:[#allocation2 + $0x900] sm:$0xff] }
  0x9f   :  { %911 = vmatprep.subr.mxu1 %v529_v37  ;;  %v524_v44 = vld [vmem:[#allocation2 + $0xd00] sm:$0xff]  ;;  %841 = vmatpush1.msra.mxu0 %v400_v38  ;;  %v393_v45 = vld [vmem:[#allocation2 + $0x8e8] sm:$0xff] }
  0xa0   :  { %912 = vmatpush1.msra.mxu1 %v528_v39  ;;  %v521_v46 = vld [vmem:[#allocation2 + $0xce8] sm:$0xff]  ;;  %842 = vmatprep.subr.mxu0 %v397_v40  ;;  %v392_v47 = vld [vmem:[#allocation2 + $0x8e0] sm:$0xff] }
  0xa1   :  { %913 = vmatprep.subr.mxu1 %v525_v42  ;;  %v520_v48 = vld [vmem:[#allocation2 + $0xce0] sm:$0xff]  ;;  %843 = vmatpush1.msra.mxu0 %v396_v43  ;;  %v389_v49 = vld [vmem:[#allocation2 + $0x8c8] sm:$0xff] }
  0xa2   :  { %914 = vmatpush1.msra.mxu1 %v524_v44  ;;  %v517_v50 = vld [vmem:[#allocation2 + $0xcc8] sm:$0xff]  ;;  %844 = vmatprep.subr.mxu0 %v393_v45  ;;  %v388_v51 = vld [vmem:[#allocation2 + $0x8c0] sm:$0xff] }
  0xa3   :  { %915 = vmatprep.subr.mxu1 %v521_v46  ;;  %v516_v53 = vld [vmem:[#allocation2 + $0xcc0] sm:$0xff]  ;;  %845 = vmatpush1.msra.mxu0 %v392_v47  ;;  %v385_v54 = vld [vmem:[#allocation2 + $0x8a8] sm:$0xff] }
  0xa4   :  { %916 = vmatpush1.msra.mxu1 %v520_v48  ;;  %v513_v55 = vld [vmem:[#allocation2 + $0xca8] sm:$0xff]  ;;  %846 = vmatprep.subr.mxu0 %v389_v49  ;;  %v384_v56 = vld [vmem:[#allocation2 + $0x8a0] sm:$0xff] }
  0xa5   :  { %917 = vmatprep.subr.mxu1 %v517_v50  ;;  %v512_v57 = vld [vmem:[#allocation2 + $0xca0] sm:$0xff]  ;;  %847 = vmatpush1.msra.mxu0 %v388_v51  ;;  %v381_v58 = vld [vmem:[#allocation2 + $0x888] sm:$0xff] }
  0xa6   :  { %918 = vmatpush1.msra.mxu1 %v516_v53  ;;  %v509_v59 = vld [vmem:[#allocation2 + $0xc88] sm:$0xff]  ;;  %848 = vmatprep.subr.mxu0 %v385_v54  ;;  %v380_v60 = vld [vmem:[#allocation2 + $0x880] sm:$0xff] }
  0xa7   :  { %919 = vmatprep.subr.mxu1 %v513_v55  ;;  %v508_v61 = vld [vmem:[#allocation2 + $0xc80] sm:$0xff]  ;;  %849 = vmatpush1.msra.mxu0 %v384_v56  ;;  %v377_v63 = vld [vmem:[#allocation2 + $0x868] sm:$0xff] }
  0xa8   :  { %920 = vmatpush1.msra.mxu1 %v512_v57  ;;  %v505_v0 = vld [vmem:[#allocation2 + $0xc68] sm:$0xff]  ;;  %850 = vmatprep.subr.mxu0 %v381_v58  ;;  %v376_v1 = vld [vmem:[#allocation2 + $0x860] sm:$0xff] }
  0xa9   :  { %921 = vmatprep.subr.mxu1 %v509_v59  ;;  %v504_v2 = vld [vmem:[#allocation2 + $0xc60] sm:$0xff]  ;;  %851 = vmatpush1.msra.mxu0 %v380_v60  ;;  %v373_v4 = vld [vmem:[#allocation2 + $0x848] sm:$0xff] }
  0xaa   :  { %922 = vmatpush1.msra.mxu1 %v508_v61  ;;  %v501_v5 = vld [vmem:[#allocation2 + $0xc48] sm:$0xff]  ;;  %852 = vmatprep.subr.mxu0 %v377_v63  ;;  %v372_v6 = vld [vmem:[#allocation2 + $0x840] sm:$0xff] }
  0xab   :  { %923 = vmatprep.subr.mxu1 %v505_v0  ;;  %v500_v7 = vld [vmem:[#allocation2 + $0xc40] sm:$0xff]  ;;  %853 = vmatpush1.msra.mxu0 %v376_v1  ;;  %v369_v9 = vld [vmem:[#allocation2 + $0x828] sm:$0xff] }
  0xac   :  { %924 = vmatpush1.msra.mxu1 %v504_v2  ;;  %v497_v10 = vld [vmem:[#allocation2 + $0xc28] sm:$0xff]  ;;  %854 = vmatprep.subr.mxu0 %v373_v4  ;;  %v368_v12 = vld [vmem:[#allocation2 + $0x820] sm:$0xff] }
  0xad   :  { %925 = vmatprep.subr.mxu1 %v501_v5  ;;  %v496_v13 = vld [vmem:[#allocation2 + $0xc20] sm:$0xff]  ;;  %855 = vmatpush1.msra.mxu0 %v372_v6  ;;  %v365_v14 = vld [vmem:[#allocation2 + $0x808] sm:$0xff] }
  0xae   :  { %926 = vmatpush1.msra.mxu1 %v500_v7  ;;  %v493_v15 = vld [vmem:[#allocation2 + $0xc08] sm:$0xff]  ;;  %856 = vmatprep.subr.mxu0 %v369_v9  ;;  %v364_v16 = vld [vmem:[#allocation2 + $0x800] sm:$0xff] }
  0xaf   :  { %927 = vmatprep.subr.mxu1 %v497_v10  ;;  %v492_v17 = vld [vmem:[#allocation2 + $0xc00] sm:$0xff]  ;;  %857 = vmatpush1.msra.mxu0 %v368_v12  ;;  %v489_v18 = vld [vmem:[#allocation2 + $0xbe8] sm:$0xff] }
  0xb0   :  { %928 = vmatpush1.msra.mxu1 %v496_v13  ;;  %v617_v19 = vld [vmem:[#allocation2 + $0xfe8] sm:$0xff]  ;;  %858 = vmatprep.subr.mxu0 %v365_v14  ;;  %v488_v20 = vld [vmem:[#allocation2 + $0xbe0] sm:$0xff] }
  0xb1   :  { %929 = vmatprep.subr.mxu1 %v493_v15  ;;  %v616_v21 = vld [vmem:[#allocation2 + $0xfe0] sm:$0xff]  ;;  %859 = vmatpush1.msra.mxu0 %v364_v16  ;;  %v485_v22 = vld [vmem:[#allocation2 + $0xbc8] sm:$0xff] }
  0xb2   :  { %930 = vmatpush1.msra.mxu1 %v492_v17  ;;  %v613_v23 = vld [vmem:[#allocation2 + $0xfc8] sm:$0xff]  ;;  %860 = vmatprep.subr.mxu0 %v489_v18  ;;  %v484_v24 = vld [vmem:[#allocation2 + $0xbc0] sm:$0xff] }
  0xb3   :  { %931 = vmatprep.subr.mxu1 %v617_v19  ;;  %v612_v25 = vld [vmem:[#allocation2 + $0xfc0] sm:$0xff]  ;;  %861 = vmatpush2.msra.mxu0 %v488_v20  ;;  %v481_v26 = vld [vmem:[#allocation2 + $0xba8] sm:$0xff] }
  0xb4   :  { %932 = vmatpush2.msra.mxu1 %v616_v21  ;;  %v609_v27 = vld [vmem:[#allocation2 + $0xfa8] sm:$0xff]  ;;  %862 = vmatprep.subr.mxu0 %v485_v22  ;;  %v480_v28 = vld [vmem:[#allocation2 + $0xba0] sm:$0xff] }
  0xb5   :  { %933 = vmatprep.subr.mxu1 %v613_v23  ;;  %v608_v29 = vld [vmem:[#allocation2 + $0xfa0] sm:$0xff]  ;;  %863 = vmatpush2.msra.mxu0 %v484_v24  ;;  %v477_v30 = vld [vmem:[#allocation2 + $0xb88] sm:$0xff] }
  0xb6   :  { %934 = vmatpush2.msra.mxu1 %v612_v25  ;;  %v605_v31 = vld [vmem:[#allocation2 + $0xf88] sm:$0xff]  ;;  %864 = vmatprep.subr.mxu0 %v481_v26  ;;  %v476_v32 = vld [vmem:[#allocation2 + $0xb80] sm:$0xff] }
  0xb7   :  { %935 = vmatprep.subr.mxu1 %v609_v27  ;;  %v604_v33 = vld [vmem:[#allocation2 + $0xf80] sm:$0xff]  ;;  %865 = vmatpush2.msra.mxu0 %v480_v28  ;;  %v473_v34 = vld [vmem:[#allocation2 + $0xb68] sm:$0xff] }
  0xb8   :  { %936 = vmatpush2.msra.mxu1 %v608_v29  ;;  %v601_v35 = vld [vmem:[#allocation2 + $0xf68] sm:$0xff]  ;;  %866 = vmatprep.subr.mxu0 %v477_v30  ;;  %v472_v36 = vld [vmem:[#allocation2 + $0xb60] sm:$0xff]  ;;  %v171_v30 = vld [vmem:[#allocation2 + $0x1f8] sm:$0xff] }
  0xb9   :  { %937 = vmatprep.subr.mxu1 %v605_v31  ;;  %v600_v37 = vld [vmem:[#allocation2 + $0xf60] sm:$0xff]  ;;  %867 = vmatpush2.msra.mxu0 %v476_v32  ;;  %v469_v38 = vld [vmem:[#allocation2 + $0xb48] sm:$0xff]  ;;  %v299_v31 = vld [vmem:[#allocation2 + $0x5f8] sm:$0xff] }
  0xba   :  { %938 = vmatpush2.msra.mxu1 %v604_v33  ;;  %v597_v39 = vld [vmem:[#allocation2 + $0xf48] sm:$0xff]  ;;  %868 = vmatprep.subr.mxu0 %v473_v34  ;;  %v468_v40 = vld [vmem:[#allocation2 + $0xb40] sm:$0xff]  ;;  %v170_v32 = vld [vmem:[#allocation2 + $0x1f0] sm:$0xff] }
  0xbb   :  { %939 = vmatprep.subr.mxu1 %v601_v35  ;;  %v596_v42 = vld [vmem:[#allocation2 + $0xf40] sm:$0xff]  ;;  %869 = vmatpush2.msra.mxu0 %v472_v36  ;;  %v465_v43 = vld [vmem:[#allocation2 + $0xb28] sm:$0xff]  ;;  %v298_v33 = vld [vmem:[#allocation2 + $0x5f0] sm:$0xff] }
  0xbc   :  { %940 = vmatpush2.msra.mxu1 %v600_v37  ;;  %v593_v44 = vld [vmem:[#allocation2 + $0xf28] sm:$0xff]  ;;  %870 = vmatprep.subr.mxu0 %v469_v38  ;;  %v464_v45 = vld [vmem:[#allocation2 + $0xb20] sm:$0xff]  ;;  %v167_v34 = vld [vmem:[#allocation2 + $0x1d8] sm:$0xff] }
  0xbd   :  { %941 = vmatprep.subr.mxu1 %v597_v39  ;;  %v592_v46 = vld [vmem:[#allocation2 + $0xf20] sm:$0xff]  ;;  %871 = vmatpush2.msra.mxu0 %v468_v40  ;;  %v461_v47 = vld [vmem:[#allocation2 + $0xb08] sm:$0xff]  ;;  %v295_v35 = vld [vmem:[#allocation2 + $0x5d8] sm:$0xff] }
  0xbe   :  { %942 = vmatpush2.msra.mxu1 %v596_v42  ;;  %v589_v48 = vld [vmem:[#allocation2 + $0xf08] sm:$0xff]  ;;  %872 = vmatprep.subr.mxu0 %v465_v43  ;;  %v460_v49 = vld [vmem:[#allocation2 + $0xb00] sm:$0xff]  ;;  %v166_v36 = vld [vmem:[#allocation2 + $0x1d0] sm:$0xff] }
  0xbf   :  { %943 = vmatprep.subr.mxu1 %v593_v44  ;;  %v588_v50 = vld [vmem:[#allocation2 + $0xf00] sm:$0xff]  ;;  %873 = vmatpush2.msra.mxu0 %v464_v45  ;;  %v457_v51 = vld [vmem:[#allocation2 + $0xae8] sm:$0xff]  ;;  %v294_v37 = vld [vmem:[#allocation2 + $0x5d0] sm:$0xff] }
  0xc0   :  { %944 = vmatpush2.msra.mxu1 %v592_v46  ;;  %v585_v53 = vld [vmem:[#allocation2 + $0xee8] sm:$0xff]  ;;  %874 = vmatprep.subr.mxu0 %v461_v47  ;;  %v456_v54 = vld [vmem:[#allocation2 + $0xae0] sm:$0xff]  ;;  %v163_v38 = vld [vmem:[#allocation2 + $0x1b8] sm:$0xff] }
  0xc1   :  { %945 = vmatprep.subr.mxu1 %v589_v48  ;;  %v584_v55 = vld [vmem:[#allocation2 + $0xee0] sm:$0xff]  ;;  %875 = vmatpush2.msra.mxu0 %v460_v49  ;;  %v453_v56 = vld [vmem:[#allocation2 + $0xac8] sm:$0xff]  ;;  %v291_v39 = vld [vmem:[#allocation2 + $0x5b8] sm:$0xff] }
  0xc2   :  { %946 = vmatpush2.msra.mxu1 %v588_v50  ;;  %v581_v57 = vld [vmem:[#allocation2 + $0xec8] sm:$0xff]  ;;  %876 = vmatprep.subr.mxu0 %v457_v51  ;;  %v452_v58 = vld [vmem:[#allocation2 + $0xac0] sm:$0xff]  ;;  %v162_v40 = vld [vmem:[#allocation2 + $0x1b0] sm:$0xff] }
  0xc3   :  { %947 = vmatprep.subr.mxu1 %v585_v53  ;;  %v580_v59 = vld [vmem:[#allocation2 + $0xec0] sm:$0xff]  ;;  %877 = vmatpush2.msra.mxu0 %v456_v54  ;;  %v449_v60 = vld [vmem:[#allocation2 + $0xaa8] sm:$0xff]  ;;  %v290_v42 = vld [vmem:[#allocation2 + $0x5b0] sm:$0xff] }
  0xc4   :  { %948 = vmatpush2.msra.mxu1 %v584_v55  ;;  %v577_v61 = vld [vmem:[#allocation2 + $0xea8] sm:$0xff]  ;;  %878 = vmatprep.subr.mxu0 %v453_v56  ;;  %v448_v63 = vld [vmem:[#allocation2 + $0xaa0] sm:$0xff]  ;;  %v159_v43 = vld [vmem:[#allocation2 + $0x198] sm:$0xff] }
  0xc5   :  { %949 = vmatprep.subr.mxu1 %v581_v57  ;;  %v576_v0 = vld [vmem:[#allocation2 + $0xea0] sm:$0xff]  ;;  %v107_v1 = vld [vmem:[%s2109_s0 + $0x8] sm:$0xff]  ;;  %879 = vmatpush2.msra.mxu0 %v452_v58  ;;  %v287_v44 = vld [vmem:[#allocation2 + $0x598] sm:$0xff] }
  0xc6   :  { %950 = vmatpush2.msra.mxu1 %v580_v59  ;;  %v445_v2 = vld [vmem:[#allocation2 + $0xa88] sm:$0xff]  ;;  %880 = vmatprep.subr.mxu0 %v449_v60  ;;  %v444_v5 = vld [vmem:[#allocation2 + $0xa80] sm:$0xff]  ;;  %v661_v10 = vcombine.high %v107_v1, %v107_v1  ;;  %v2044_v16 = vrot.slane %v107_v1, %v2020_v52  ;;  %v158_v45 = vld [vmem:[#allocation2 + $0x190] sm:$0xff] }
  0xc7   :  { %v573_v4 = vld [vmem:[#allocation2 + $0xe88] sm:$0xff]  ;;  %951 = vmatprep.subr.mxu1 %v577_v61  ;;  %v572_v6 = vld [vmem:[#allocation2 + $0xe80] sm:$0xff]  ;;  %881 = vmatpush2.msra.mxu0 %v448_v63  ;;  %v286_v46 = vld [vmem:[#allocation2 + $0x590] sm:$0xff] }
  0xc8   :  { %952 = vmatpush2.msra.mxu1 %v576_v0  ;;  %v441_v7 = vld [vmem:[#allocation2 + $0xa68] sm:$0xff]  ;;  %882 = vmatprep.subr.mxu0 %v445_v2  ;;  %v440_v12 = vld [vmem:[#allocation2 + $0xa60] sm:$0xff]  ;;  %v2047_v21 = vrot.slane %v661_v10, %v2020_v52  ;;  %v2051_v26 = vcombine.high %v2044_v16, %v2044_v16  ;;  %v155_v47 = vld [vmem:[#allocation2 + $0x178] sm:$0xff] }
  0xc9   :  { %v569_v9 = vld [vmem:[#allocation2 + $0xe68] sm:$0xff]  ;;  %953 = vmatprep.subr.mxu1 %v573_v4  ;;  %v568_v13 = vld [vmem:[#allocation2 + $0xe60] sm:$0xff]  ;;  %883 = vmatpush2.msra.mxu0 %v444_v5  ;;  %v283_v48 = vld [vmem:[#allocation2 + $0x578] sm:$0xff] }
  0xca   :  { %954 = vmatpush2.msra.mxu1 %v572_v6  ;;  %v437_v14 = vld [vmem:[#allocation2 + $0xa48] sm:$0xff]  ;;  %884 = vmatprep.subr.mxu0 %v441_v7  ;;  %v436_v17 = vld [vmem:[#allocation2 + $0xa40] sm:$0xff]  ;;  %v2055_v29 = vcombine.high %v2047_v21, %v2047_v21  ;;  %v154_v49 = vld [vmem:[#allocation2 + $0x170] sm:$0xff] }
  0xcb   :  { %v565_v15 = vld [vmem:[#allocation2 + $0xe48] sm:$0xff]  ;;  %955 = vmatprep.subr.mxu1 %v569_v9  ;;  %v564_v18 = vld [vmem:[#allocation2 + $0xe40] sm:$0xff]  ;;  %885 = vmatpush2.msra.mxu0 %v440_v12  ;;  %v282_v50 = vld [vmem:[#allocation2 + $0x570] sm:$0xff] }
  0xcc   :  { %956 = vmatpush2.msra.mxu1 %v568_v13  ;;  %v433_v19 = vld [vmem:[#allocation2 + $0xa28] sm:$0xff]  ;;  %886 = vmatprep.subr.mxu0 %v437_v14  ;;  %v432_v22 = vld [vmem:[#allocation2 + $0xa20] sm:$0xff]  ;;  %v151_v51 = vld [vmem:[#allocation2 + $0x158] sm:$0xff] }
  0xcd   :  { %v561_v20 = vld [vmem:[#allocation2 + $0xe28] sm:$0xff]  ;;  %957 = vmatprep.subr.mxu1 %v565_v15  ;;  %v560_v23 = vld [vmem:[#allocation2 + $0xe20] sm:$0xff]  ;;  %887 = vmatpush2.msra.mxu0 %v436_v17  ;;  %v279_v53 = vld [vmem:[#allocation2 + $0x558] sm:$0xff] }
  0xce   :  { %958 = vmatpush2.msra.mxu1 %v564_v18  ;;  %v429_v24 = vld [vmem:[#allocation2 + $0xa08] sm:$0xff]  ;;  %888 = vmatprep.subr.mxu0 %v433_v19  ;;  %v428_v27 = vld [vmem:[#allocation2 + $0xa00] sm:$0xff]  ;;  %v150_v54 = vld [vmem:[#allocation2 + $0x150] sm:$0xff] }
  0xcf   :  { %v557_v25 = vld [vmem:[#allocation2 + $0xe08] sm:$0xff]  ;;  %959 = vmatprep.subr.mxu1 %v561_v20  ;;  %889 = vmatpush2.msra.mxu0 %v432_v22  ;;  %v556_v28 = vld [vmem:[#allocation2 + $0xe00] sm:$0xff]  ;;  %v278_v55 = vld [vmem:[#allocation2 + $0x550] sm:$0xff] }
  0xd0   :  { %960 = vmatpush2.msra.mxu1 %v560_v23  ;;  %890 = vmatprep.subr.mxu0 %v429_v24  ;;  %v147_v56 = vld [vmem:[#allocation2 + $0x138] sm:$0xff]  ;;  %v146_v58 = vld [vmem:[#allocation2 + $0x130] sm:$0xff] }
  0xd1   :  { %961 = vmatprep.subr.mxu1 %v557_v25  ;;  %891 = vmatpush2.msra.mxu0 %v428_v27  ;;  %v275_v57 = vld [vmem:[#allocation2 + $0x538] sm:$0xff]  ;;  %v274_v59 = vld [vmem:[#allocation2 + $0x530] sm:$0xff] }
  0xd2   :  { %892 = vmatprep.mubr.f32.mxu0 %v2051_v26  ;;  %962 = vmatpush2.msra.mxu1 %v556_v28  ;;  %v143_v60 = vld [vmem:[#allocation2 + $0x118] sm:$0xff]  ;;  %v142_v63 = vld [vmem:[#allocation2 + $0x110] sm:$0xff] }
  0xd3   :  { %893 = vmatmul.mubr.f32.vlgmr.msra.gmra.mxu0 %v2044_v16  ;;  %963 = vmatprep.mubr.f32.mxu1 %v2055_v29  ;;  %v271_v61 = vld [vmem:[#allocation2 + $0x518] sm:$0xff]  ;;  %v270_v0 = vld [vmem:[#allocation2 + $0x510] sm:$0xff] }
  0xd4   :  { %970 = vmatprep.subr.mxu0 %v171_v30  ;;  %1041 = vmatprep.subr.mxu1 %v299_v31  ;;  %v139_v1 = vld [vmem:[#allocation2 + $0xf8] sm:$0xff]  ;;  %v138_v4 = vld [vmem:[#allocation2 + $0xf0] sm:$0xff] }
  0xd5   :  { %964 = vmatmul.mubr.f32.vlgmr.msra.gmra.mxu1 %v2047_v21  ;;  %971 = vmatpush1.msra.mxu0 %v170_v32  ;;  %v267_v2 = vld [vmem:[#allocation2 + $0x4f8] sm:$0xff]  ;;  %v266_v5 = vld [vmem:[#allocation2 + $0x4f0] sm:$0xff] }
  0xd6   :  { %1042 = vmatpush1.msra.mxu1 %v298_v33  ;;  %972 = vmatprep.subr.mxu0 %v167_v34  ;;  %v135_v6 = vld [vmem:[#allocation2 + $0xd8] sm:$0xff]  ;;  %v134_v9 = vld [vmem:[#allocation2 + $0xd0] sm:$0xff] }
  0xd7   :  { %1043 = vmatprep.subr.mxu1 %v295_v35  ;;  %973 = vmatpush1.msra.mxu0 %v166_v36  ;;  %v263_v7 = vld [vmem:[#allocation2 + $0x4d8] sm:$0xff]  ;;  %v262_v10 = vld [vmem:[#allocation2 + $0x4d0] sm:$0xff] }
  0xd8   :  { %1044 = vmatpush1.msra.mxu1 %v294_v37  ;;  %974 = vmatprep.subr.mxu0 %v163_v38  ;;  %v131_v12 = vld [vmem:[#allocation2 + $0xb8] sm:$0xff]  ;;  %v130_v14 = vld [vmem:[#allocation2 + $0xb0] sm:$0xff] }
  0xd9   :  { %1045 = vmatprep.subr.mxu1 %v291_v39  ;;  %975 = vmatpush1.msra.mxu0 %v162_v40  ;;  %v259_v13 = vld [vmem:[#allocation2 + $0x4b8] sm:$0xff]  ;;  %v258_v15 = vld [vmem:[#allocation2 + $0x4b0] sm:$0xff] }
  0xda   :  { %1046 = vmatpush1.msra.mxu1 %v290_v42  ;;  %976 = vmatprep.subr.mxu0 %v159_v43  ;;  %v127_v17 = vld [vmem:[#allocation2 + $0x98] sm:$0xff]  ;;  %v126_v19 = vld [vmem:[#allocation2 + $0x90] sm:$0xff] }
  0xdb   :  { %1047 = vmatprep.subr.mxu1 %v287_v44  ;;  %977 = vmatpush1.msra.mxu0 %v158_v45  ;;  %v255_v18 = vld [vmem:[#allocation2 + $0x498] sm:$0xff]  ;;  %v254_v20 = vld [vmem:[#allocation2 + $0x490] sm:$0xff] }
  0xdc   :  { %1048 = vmatpush1.msra.mxu1 %v286_v46  ;;  %978 = vmatprep.subr.mxu0 %v155_v47  ;;  %v123_v22 = vld [vmem:[#allocation2 + $0x78] sm:$0xff]  ;;  %v122_v24 = vld [vmem:[#allocation2 + $0x70] sm:$0xff] }
  0xdd   :  { %1049 = vmatprep.subr.mxu1 %v283_v48  ;;  %979 = vmatpush1.msra.mxu0 %v154_v49  ;;  %v251_v23 = vld [vmem:[#allocation2 + $0x478] sm:$0xff]  ;;  %v250_v25 = vld [vmem:[#allocation2 + $0x470] sm:$0xff] }
  0xde   :  { %1050 = vmatpush1.msra.mxu1 %v282_v50  ;;  %980 = vmatprep.subr.mxu0 %v151_v51  ;;  %v119_v27 = vld [vmem:[#allocation2 + $0x58] sm:$0xff]  ;;  %v118_v30 = vld [vmem:[#allocation2 + $0x50] sm:$0xff] }
  0xdf   :  { %1051 = vmatprep.subr.mxu1 %v279_v53  ;;  %981 = vmatpush1.msra.mxu0 %v150_v54  ;;  %v247_v28 = vld [vmem:[#allocation2 + $0x458] sm:$0xff]  ;;  %v246_v31 = vld [vmem:[#allocation2 + $0x450] sm:$0xff] }
  0xe0   :  { %1052 = vmatpush1.msra.mxu1 %v278_v55  ;;  %982 = vmatprep.subr.mxu0 %v147_v56  ;;  %v115_v32 = vld [vmem:[#allocation2 + $0x38] sm:$0xff]  ;;  %v114_v34 = vld [vmem:[#allocation2 + $0x30] sm:$0xff] }
  0xe1   :  { %1053 = vmatprep.subr.mxu1 %v275_v57  ;;  %983 = vmatpush1.msra.mxu0 %v146_v58  ;;  %v243_v33 = vld [vmem:[#allocation2 + $0x438] sm:$0xff]  ;;  %v242_v35 = vld [vmem:[#allocation2 + $0x430] sm:$0xff] }
  0xe2   :  { %1054 = vmatpush1.msra.mxu1 %v274_v59  ;;  %984 = vmatprep.subr.mxu0 %v143_v60  ;;  %v111_v36 = vld [vmem:[#allocation2 + $0x18] sm:$0xff]  ;;  %v110_v38 = vld [vmem:[#allocation2 + $0x10] sm:$0xff] }
  0xe3   :  { %1055 = vmatprep.subr.mxu1 %v271_v61  ;;  %985 = vmatpush1.msra.mxu0 %v142_v63  ;;  %v239_v37 = vld [vmem:[#allocation2 + $0x418] sm:$0xff]  ;;  %v238_v39 = vld [vmem:[#allocation2 + $0x410] sm:$0xff] }
  0xe4   :  { %1056 = vmatpush1.msra.mxu1 %v270_v0  ;;  %986 = vmatprep.subr.mxu0 %v139_v1  ;;  %v235_v40 = vld [vmem:[#allocation2 + $0x3f8] sm:$0xff]  ;;  %v234_v43 = vld [vmem:[#allocation2 + $0x3f0] sm:$0xff] }
  0xe5   :  { %1057 = vmatprep.subr.mxu1 %v267_v2  ;;  %987 = vmatpush1.msra.mxu0 %v138_v4  ;;  %v363_v42 = vld [vmem:[#allocation2 + $0x7f8] sm:$0xff]  ;;  %v362_v44 = vld [vmem:[#allocation2 + $0x7f0] sm:$0xff] }
  0xe6   :  { %1058 = vmatpush1.msra.mxu1 %v266_v5  ;;  %988 = vmatprep.subr.mxu0 %v135_v6  ;;  %v231_v45 = vld [vmem:[#allocation2 + $0x3d8] sm:$0xff]  ;;  %v230_v47 = vld [vmem:[#allocation2 + $0x3d0] sm:$0xff] }
  0xe7   :  { %1059 = vmatprep.subr.mxu1 %v263_v7  ;;  %989 = vmatpush1.msra.mxu0 %v134_v9  ;;  %v359_v46 = vld [vmem:[#allocation2 + $0x7d8] sm:$0xff]  ;;  %v358_v48 = vld [vmem:[#allocation2 + $0x7d0] sm:$0xff] }
  0xe8   :  { %1060 = vmatpush1.msra.mxu1 %v262_v10  ;;  %990 = vmatprep.subr.mxu0 %v131_v12  ;;  %v227_v49 = vld [vmem:[#allocation2 + $0x3b8] sm:$0xff]  ;;  %v226_v51 = vld [vmem:[#allocation2 + $0x3b0] sm:$0xff] }
  0xe9   :  { %1061 = vmatprep.subr.mxu1 %v259_v13  ;;  %991 = vmatpush1.msra.mxu0 %v130_v14  ;;  %v355_v50 = vld [vmem:[#allocation2 + $0x7b8] sm:$0xff]  ;;  %v354_v53 = vld [vmem:[#allocation2 + $0x7b0] sm:$0xff] }
  0xea   :  { %1062 = vmatpush1.msra.mxu1 %v258_v15  ;;  %992 = vmatprep.subr.mxu0 %v127_v17  ;;  %v223_v54 = vld [vmem:[#allocation2 + $0x398] sm:$0xff]  ;;  %v222_v56 = vld [vmem:[#allocation2 + $0x390] sm:$0xff] }
  0xeb   :  { %1063 = vmatprep.subr.mxu1 %v255_v18  ;;  %993 = vmatpush1.msra.mxu0 %v126_v19  ;;  %v351_v55 = vld [vmem:[#allocation2 + $0x798] sm:$0xff]  ;;  %v350_v57 = vld [vmem:[#allocation2 + $0x790] sm:$0xff] }
  0xec   :  { %1064 = vmatpush1.msra.mxu1 %v254_v20  ;;  %994 = vmatprep.subr.mxu0 %v123_v22  ;;  %v219_v58 = vld [vmem:[#allocation2 + $0x378] sm:$0xff]  ;;  %v218_v60 = vld [vmem:[#allocation2 + $0x370] sm:$0xff] }
  0xed   :  { %1065 = vmatprep.subr.mxu1 %v251_v23  ;;  %995 = vmatpush1.msra.mxu0 %v122_v24  ;;  %v347_v59 = vld [vmem:[#allocation2 + $0x778] sm:$0xff]  ;;  %v346_v61 = vld [vmem:[#allocation2 + $0x770] sm:$0xff] }
  0xee   :  { %1066 = vmatpush1.msra.mxu1 %v250_v25  ;;  %996 = vmatprep.subr.mxu0 %v119_v27  ;;  %v215_v63 = vld [vmem:[#allocation2 + $0x358] sm:$0xff]  ;;  %v214_v1 = vld [vmem:[#allocation2 + $0x350] sm:$0xff] }
  0xef   :  { %1067 = vmatprep.subr.mxu1 %v247_v28  ;;  %997 = vmatpush1.msra.mxu0 %v118_v30  ;;  %v343_v0 = vld [vmem:[#allocation2 + $0x758] sm:$0xff]  ;;  %v342_v2 = vld [vmem:[#allocation2 + $0x750] sm:$0xff] }
  0xf0   :  { %1068 = vmatpush1.msra.mxu1 %v246_v31  ;;  %998 = vmatprep.subr.mxu0 %v115_v32  ;;  %v211_v4 = vld [vmem:[#allocation2 + $0x338] sm:$0xff]  ;;  %v210_v6 = vld [vmem:[#allocation2 + $0x330] sm:$0xff] }
  0xf1   :  { %1069 = vmatprep.subr.mxu1 %v243_v33  ;;  %999 = vmatpush1.msra.mxu0 %v114_v34  ;;  %v339_v5 = vld [vmem:[#allocation2 + $0x738] sm:$0xff]  ;;  %v338_v7 = vld [vmem:[#allocation2 + $0x730] sm:$0xff] }
  0xf2   :  { %1070 = vmatpush1.msra.mxu1 %v242_v35  ;;  %1000 = vmatprep.subr.mxu0 %v111_v36  ;;  %v207_v9 = vld [vmem:[#allocation2 + $0x318] sm:$0xff]  ;;  %v206_v12 = vld [vmem:[#allocation2 + $0x310] sm:$0xff] }
  0xf3   :  { %1071 = vmatprep.subr.mxu1 %v239_v37  ;;  %1001 = vmatpush1.msra.mxu0 %v110_v38  ;;  %v335_v10 = vld [vmem:[#allocation2 + $0x718] sm:$0xff]  ;;  %v334_v13 = vld [vmem:[#allocation2 + $0x710] sm:$0xff] }
  0xf4   :  { %1072 = vmatpush1.msra.mxu1 %v238_v39  ;;  %1002 = vmatprep.subr.mxu0 %v235_v40  ;;  %v203_v14 = vld [vmem:[#allocation2 + $0x2f8] sm:$0xff]  ;;  %v202_v17 = vld [vmem:[#allocation2 + $0x2f0] sm:$0xff] }
  0xf5   :  { %1073 = vmatprep.subr.mxu1 %v363_v42  ;;  %1003 = vmatpush2.msra.mxu0 %v234_v43  ;;  %v331_v15 = vld [vmem:[#allocation2 + $0x6f8] sm:$0xff]  ;;  %v330_v18 = vld [vmem:[#allocation2 + $0x6f0] sm:$0xff] }
  0xf6   :  { %1074 = vmatpush2.msra.mxu1 %v362_v44  ;;  %1004 = vmatprep.subr.mxu0 %v231_v45  ;;  %v199_v19 = vld [vmem:[#allocation2 + $0x2d8] sm:$0xff]  ;;  %v198_v22 = vld [vmem:[#allocation2 + $0x2d0] sm:$0xff] }
  0xf7   :  { %1075 = vmatprep.subr.mxu1 %v359_v46  ;;  %1005 = vmatpush2.msra.mxu0 %v230_v47  ;;  %v327_v20 = vld [vmem:[#allocation2 + $0x6d8] sm:$0xff]  ;;  %v326_v23 = vld [vmem:[#allocation2 + $0x6d0] sm:$0xff] }
  0xf8   :  { %1076 = vmatpush2.msra.mxu1 %v358_v48  ;;  %1006 = vmatprep.subr.mxu0 %v227_v49  ;;  %v195_v24 = vld [vmem:[#allocation2 + $0x2b8] sm:$0xff]  ;;  %v194_v27 = vld [vmem:[#allocation2 + $0x2b0] sm:$0xff] }
  0xf9   :  { %1077 = vmatprep.subr.mxu1 %v355_v50  ;;  %1007 = vmatpush2.msra.mxu0 %v226_v51  ;;  %v323_v25 = vld [vmem:[#allocation2 + $0x6b8] sm:$0xff]  ;;  %v322_v28 = vld [vmem:[#allocation2 + $0x6b0] sm:$0xff] }
  0xfa   :  { %1078 = vmatpush2.msra.mxu1 %v354_v53  ;;  %1008 = vmatprep.subr.mxu0 %v223_v54  ;;  %v191_v30 = vld [vmem:[#allocation2 + $0x298] sm:$0xff]  ;;  %v190_v32 = vld [vmem:[#allocation2 + $0x290] sm:$0xff] }
  0xfb   :  { %1079 = vmatprep.subr.mxu1 %v351_v55  ;;  %1009 = vmatpush2.msra.mxu0 %v222_v56  ;;  %v319_v31 = vld [vmem:[#allocation2 + $0x698] sm:$0xff]  ;;  %v318_v33 = vld [vmem:[#allocation2 + $0x690] sm:$0xff] }
  0xfc   :  { %1080 = vmatpush2.msra.mxu1 %v350_v57  ;;  %1010 = vmatprep.subr.mxu0 %v219_v58  ;;  %v187_v34 = vld [vmem:[#allocation2 + $0x278] sm:$0xff]  ;;  %v186_v36 = vld [vmem:[#allocation2 + $0x270] sm:$0xff] }
  0xfd   :  { %1081 = vmatprep.subr.mxu1 %v347_v59  ;;  %1011 = vmatpush2.msra.mxu0 %v218_v60  ;;  %v315_v35 = vld [vmem:[#allocation2 + $0x678] sm:$0xff]  ;;  %v314_v37 = vld [vmem:[#allocation2 + $0x670] sm:$0xff] }
  0xfe   :  { %1082 = vmatpush2.msra.mxu1 %v346_v61  ;;  %1012 = vmatprep.subr.mxu0 %v215_v63  ;;  %v183_v38 = vld [vmem:[#allocation2 + $0x258] sm:$0xff]  ;;  %v182_v40 = vld [vmem:[#allocation2 + $0x250] sm:$0xff] }
  0xff   :  { %1083 = vmatprep.subr.mxu1 %v343_v0  ;;  %1013 = vmatpush2.msra.mxu0 %v214_v1  ;;  %v311_v39 = vld [vmem:[#allocation2 + $0x658] sm:$0xff]  ;;  %v310_v42 = vld [vmem:[#allocation2 + $0x650] sm:$0xff] }
 0x100   :  { %1084 = vmatpush2.msra.mxu1 %v342_v2  ;;  %1014 = vmatprep.subr.mxu0 %v211_v4  ;;  %v179_v43 = vld [vmem:[#allocation2 + $0x238] sm:$0xff]  ;;  %v178_v45 = vld [vmem:[#allocation2 + $0x230] sm:$0xff] }
 0x101   :  { %1085 = vmatprep.subr.mxu1 %v339_v5  ;;  %1015 = vmatpush2.msra.mxu0 %v210_v6  ;;  %v307_v44 = vld [vmem:[#allocation2 + $0x638] sm:$0xff]  ;;  %v306_v46 = vld [vmem:[#allocation2 + $0x630] sm:$0xff] }
 0x102   :  { %1086 = vmatpush2.msra.mxu1 %v338_v7  ;;  %1016 = vmatprep.subr.mxu0 %v207_v9  ;;  %v175_v47 = vld [vmem:[#allocation2 + $0x218] sm:$0xff]  ;;  %v174_v49 = vld [vmem:[#allocation2 + $0x210] sm:$0xff] }
 0x103   :  { %1087 = vmatprep.subr.mxu1 %v335_v10  ;;  %1017 = vmatpush2.msra.mxu0 %v206_v12  ;;  %v303_v48 = vld [vmem:[#allocation2 + $0x618] sm:$0xff]  ;;  %v302_v50 = vld [vmem:[#allocation2 + $0x610] sm:$0xff] }
 0x104   :  { %1088 = vmatpush2.msra.mxu1 %v334_v13  ;;  %1018 = vmatprep.subr.mxu0 %v203_v14  ;;  %v427_v51 = vld [vmem:[#allocation2 + $0x9f8] sm:$0xff]  ;;  %v426_v54 = vld [vmem:[#allocation2 + $0x9f0] sm:$0xff] }
 0x105   :  { %1089 = vmatprep.subr.mxu1 %v331_v15  ;;  %1019 = vmatpush2.msra.mxu0 %v202_v17  ;;  %v555_v53 = vld [vmem:[#allocation2 + $0xdf8] sm:$0xff]  ;;  %v554_v55 = vld [vmem:[#allocation2 + $0xdf0] sm:$0xff] }
 0x106   :  { %1090 = vmatpush2.msra.mxu1 %v330_v18  ;;  %1020 = vmatprep.subr.mxu0 %v199_v19  ;;  %v423_v56 = vld [vmem:[#allocation2 + $0x9d8] sm:$0xff]  ;;  %v422_v58 = vld [vmem:[#allocation2 + $0x9d0] sm:$0xff] }
 0x107   :  { %1091 = vmatprep.subr.mxu1 %v327_v20  ;;  %1021 = vmatpush2.msra.mxu0 %v198_v22  ;;  %v551_v57 = vld [vmem:[#allocation2 + $0xdd8] sm:$0xff]  ;;  %v550_v59 = vld [vmem:[#allocation2 + $0xdd0] sm:$0xff] }
 0x108   :  { %1092 = vmatpush2.msra.mxu1 %v326_v23  ;;  %1022 = vmatprep.subr.mxu0 %v195_v24  ;;  %v419_v60 = vld [vmem:[#allocation2 + $0x9b8] sm:$0xff]  ;;  %v418_v61 = vld [vmem:[#allocation2 + $0x9b0] sm:$0xff] }
 0x109   :  { %1093 = vmatprep.subr.mxu1 %v323_v25  ;;  %1023 = vmatpush2.msra.mxu0 %v194_v27  ;;  %v415_v63 = vld [vmem:[#allocation2 + $0x998] sm:$0xff]  ;;  %v414_v0 = vld [vmem:[#allocation2 + $0x990] sm:$0xff] }
 0x10a   :  { %1094 = vmatpush2.msra.mxu1 %v322_v28  ;;  %1024 = vmatprep.subr.mxu0 %v191_v30  ;;  %v542_v1 = vld [vmem:[#allocation2 + $0xd90] sm:$0xff]  ;;  %v539_v2 = vld [vmem:[#allocation2 + $0xd78] sm:$0xff] }
 0x10b   :  { %1095 = vmatprep.subr.mxu1 %v319_v31  ;;  %1025 = vmatpush2.msra.mxu0 %v190_v32  ;;  %v410_v4 = vld [vmem:[#allocation2 + $0x970] sm:$0xff]  ;;  %v407_v6 = vld [vmem:[#allocation2 + $0x958] sm:$0xff] }
 0x10c   :  { %1096 = vmatpush2.msra.mxu1 %v318_v33  ;;  %1026 = vmatprep.subr.mxu0 %v187_v34  ;;  %v538_v5 = vld [vmem:[#allocation2 + $0xd70] sm:$0xff]  ;;  %v535_v7 = vld [vmem:[#allocation2 + $0xd58] sm:$0xff] }
 0x10d   :  { %1097 = vmatprep.subr.mxu1 %v315_v35  ;;  %1027 = vmatpush2.msra.mxu0 %v186_v36  ;;  %v406_v9 = vld [vmem:[#allocation2 + $0x950] sm:$0xff]  ;;  %v403_v12 = vld [vmem:[#allocation2 + $0x938] sm:$0xff] }
 0x10e   :  { %1098 = vmatpush2.msra.mxu1 %v314_v37  ;;  %1028 = vmatprep.subr.mxu0 %v183_v38  ;;  %v534_v10 = vld [vmem:[#allocation2 + $0xd50] sm:$0xff]  ;;  %v531_v13 = vld [vmem:[#allocation2 + $0xd38] sm:$0xff] }
 0x10f   :  { %1099 = vmatprep.subr.mxu1 %v311_v39  ;;  %1029 = vmatpush2.msra.mxu0 %v182_v40  ;;  %v402_v14 = vld [vmem:[#allocation2 + $0x930] sm:$0xff]  ;;  %v399_v17 = vld [vmem:[#allocation2 + $0x918] sm:$0xff] }
 0x110   :  { %1100 = vmatpush2.msra.mxu1 %v310_v42  ;;  %1030 = vmatprep.subr.mxu0 %v179_v43  ;;  %v530_v15 = vld [vmem:[#allocation2 + $0xd30] sm:$0xff]  ;;  %v527_v18 = vld [vmem:[#allocation2 + $0xd18] sm:$0xff] }
 0x111   :  { %1101 = vmatprep.subr.mxu1 %v307_v44  ;;  %1031 = vmatpush2.msra.mxu0 %v178_v45  ;;  %v398_v19 = vld [vmem:[#allocation2 + $0x910] sm:$0xff]  ;;  %v395_v22 = vld [vmem:[#allocation2 + $0x8f8] sm:$0xff] }
 0x112   :  { %1102 = vmatpush2.msra.mxu1 %v306_v46  ;;  %1032 = vmatprep.subr.mxu0 %v175_v47  ;;  %v526_v20 = vld [vmem:[#allocation2 + $0xd10] sm:$0xff]  ;;  %v523_v23 = vld [vmem:[#allocation2 + $0xcf8] sm:$0xff] }
 0x113   :  { %1103 = vmatprep.subr.mxu1 %v303_v48  ;;  %1033 = vmatpush2.msra.mxu0 %v174_v49  ;;  %v394_v24 = vld [vmem:[#allocation2 + $0x8f0] sm:$0xff]  ;;  %v391_v27 = vld [vmem:[#allocation2 + $0x8d8] sm:$0xff] }
 0x114   :  { %1034 = vmatprep.mubr.f32.mxu0 %v2030_v8  ;;  %1104 = vmatpush2.msra.mxu1 %v302_v50  ;;  %v547_v8 = vld [vmem:[#allocation2 + $0xdb8] sm:$0xff]  ;;  %v522_v25 = vld [vmem:[#allocation2 + $0xcf0] sm:$0xff] }
 0x115   :  { %1035 = vmatmul.mubr.f32.vlgmr.msra.gmra.mxu0 %v2023_v62  ;;  %1105 = vmatprep.mubr.f32.mxu1 %v2034_v11  ;;  %v546_v62 = vld [vmem:[#allocation2 + $0xdb0] sm:$0xff]  ;;  %v543_v11 = vld [vmem:[#allocation2 + $0xd98] sm:$0xff] }
 0x116   :  { %1112 = vmatprep.subr.mxu0 %v427_v51  ;;  %1183 = vmatprep.subr.mxu1 %v555_v53  ;;  %v519_v28 = vld [vmem:[#allocation2 + $0xcd8] sm:$0xff]  ;;  %v390_v30 = vld [vmem:[#allocation2 + $0x8d0] sm:$0xff] }
 0x117   :  { %1106 = vmatmul.mubr.f32.vlgmr.msra.gmra.mxu1 %v2026_v3  ;;  %1113 = vmatpush1.msra.mxu0 %v426_v54  ;;  %v411_v3 = vld [vmem:[#allocation2 + $0x978] sm:$0xff]  ;;  %v518_v31 = vld [vmem:[#allocation2 + $0xcd0] sm:$0xff] }
 0x118   :  { %1184 = vmatpush1.msra.mxu1 %v554_v55  ;;  %1114 = vmatprep.subr.mxu0 %v423_v56  ;;  %v387_v32 = vld [vmem:[#allocation2 + $0x8b8] sm:$0xff]  ;;  %v386_v34 = vld [vmem:[#allocation2 + $0x8b0] sm:$0xff] }
 0x119   :  { %1185 = vmatprep.subr.mxu1 %v551_v57  ;;  %1115 = vmatpush1.msra.mxu0 %v422_v58  ;;  %v515_v33 = vld [vmem:[#allocation2 + $0xcb8] sm:$0xff]  ;;  %v514_v35 = vld [vmem:[#allocation2 + $0xcb0] sm:$0xff] }
 0x11a   :  { %1186 = vmatpush1.msra.mxu1 %v550_v59  ;;  %1116 = vmatprep.subr.mxu0 %v419_v60  ;;  %v383_v36 = vld [vmem:[#allocation2 + $0x898] sm:$0xff]  ;;  %v382_v38 = vld [vmem:[#allocation2 + $0x890] sm:$0xff] }
 0x11b   :  { %1187 = vmatprep.subr.mxu1 %v547_v8  ;;  %1117 = vmatpush1.msra.mxu0 %v418_v61  ;;  %v511_v37 = vld [vmem:[#allocation2 + $0xc98] sm:$0xff]  ;;  %v510_v39 = vld [vmem:[#allocation2 + $0xc90] sm:$0xff] }
 0x11c   :  { %1188 = vmatpush1.msra.mxu1 %v546_v62  ;;  %1118 = vmatprep.subr.mxu0 %v415_v63  ;;  %v379_v40 = vld [vmem:[#allocation2 + $0x878] sm:$0xff]  ;;  %v378_v43 = vld [vmem:[#allocation2 + $0x870] sm:$0xff] }
 0x11d   :  { %1189 = vmatprep.subr.mxu1 %v543_v11  ;;  %1119 = vmatpush1.msra.mxu0 %v414_v0  ;;  %v507_v42 = vld [vmem:[#allocation2 + $0xc78] sm:$0xff]  ;;  %v506_v44 = vld [vmem:[#allocation2 + $0xc70] sm:$0xff] }
 0x11e   :  { %1190 = vmatpush1.msra.mxu1 %v542_v1  ;;  %1120 = vmatprep.subr.mxu0 %v411_v3  ;;  %v375_v45 = vld [vmem:[#allocation2 + $0x858] sm:$0xff]  ;;  %v374_v47 = vld [vmem:[#allocation2 + $0x850] sm:$0xff] }
 0x11f   :  { %1191 = vmatprep.subr.mxu1 %v539_v2  ;;  %1121 = vmatpush1.msra.mxu0 %v410_v4  ;;  %v503_v46 = vld [vmem:[#allocation2 + $0xc58] sm:$0xff]  ;;  %v502_v48 = vld [vmem:[#allocation2 + $0xc50] sm:$0xff] }
 0x120   :  { %1192 = vmatpush1.msra.mxu1 %v538_v5  ;;  %1122 = vmatprep.subr.mxu0 %v407_v6  ;;  %v371_v49 = vld [vmem:[#allocation2 + $0x838] sm:$0xff]  ;;  %v370_v51 = vld [vmem:[#allocation2 + $0x830] sm:$0xff] }
 0x121   :  { %1193 = vmatprep.subr.mxu1 %v535_v7  ;;  %1123 = vmatpush1.msra.mxu0 %v406_v9  ;;  %v499_v50 = vld [vmem:[#allocation2 + $0xc38] sm:$0xff]  ;;  %v498_v53 = vld [vmem:[#allocation2 + $0xc30] sm:$0xff] }
 0x122   :  { %1194 = vmatpush1.msra.mxu1 %v534_v10  ;;  %1124 = vmatprep.subr.mxu0 %v403_v12  ;;  %v367_v54 = vld [vmem:[#allocation2 + $0x818] sm:$0xff]  ;;  %v366_v56 = vld [vmem:[#allocation2 + $0x810] sm:$0xff] }
 0x123   :  { %1195 = vmatprep.subr.mxu1 %v531_v13  ;;  %1125 = vmatpush1.msra.mxu0 %v402_v14  ;;  %v495_v55 = vld [vmem:[#allocation2 + $0xc18] sm:$0xff]  ;;  %v494_v57 = vld [vmem:[#allocation2 + $0xc10] sm:$0xff] }
 0x124   :  { %1196 = vmatpush1.msra.mxu1 %v530_v15  ;;  %1126 = vmatprep.subr.mxu0 %v399_v17  ;;  %v491_v58 = vld [vmem:[#allocation2 + $0xbf8] sm:$0xff]  ;;  %v490_v60 = vld [vmem:[#allocation2 + $0xbf0] sm:$0xff] }
 0x125   :  { %1197 = vmatprep.subr.mxu1 %v527_v18  ;;  %1127 = vmatpush1.msra.mxu0 %v398_v19  ;;  %v619_v59 = vld [vmem:[#allocation2 + $0xff8] sm:$0xff]  ;;  %v618_v8 = vld [vmem:[#allocation2 + $0xff0] sm:$0xff] }
 0x126   :  { %1198 = vmatpush1.msra.mxu1 %v526_v20  ;;  %1128 = vmatprep.subr.mxu0 %v395_v22  ;;  %v487_v61 = vld [vmem:[#allocation2 + $0xbd8] sm:$0xff]  ;;  %v486_v63 = vld [vmem:[#allocation2 + $0xbd0] sm:$0xff] }
 0x127   :  { %1199 = vmatprep.subr.mxu1 %v523_v23  ;;  %1129 = vmatpush1.msra.mxu0 %v394_v24  ;;  %v615_v62 = vld [vmem:[#allocation2 + $0xfd8] sm:$0xff]  ;;  %v614_v11 = vld [vmem:[#allocation2 + $0xfd0] sm:$0xff] }
 0x128   :  { %1200 = vmatpush1.msra.mxu1 %v522_v25  ;;  %1130 = vmatprep.subr.mxu0 %v391_v27  ;;  %v483_v0 = vld [vmem:[#allocation2 + $0xbb8] sm:$0xff]  ;;  %v482_v3 = vld [vmem:[#allocation2 + $0xbb0] sm:$0xff] }
 0x129   :  { %1201 = vmatprep.subr.mxu1 %v519_v28  ;;  %1131 = vmatpush1.msra.mxu0 %v390_v30  ;;  %v611_v1 = vld [vmem:[#allocation2 + $0xfb8] sm:$0xff]  ;;  %v610_v2 = vld [vmem:[#allocation2 + $0xfb0] sm:$0xff] }
 0x12a   :  { %1202 = vmatpush1.msra.mxu1 %v518_v31  ;;  %1132 = vmatprep.subr.mxu0 %v387_v32  ;;  %v479_v4 = vld [vmem:[#allocation2 + $0xb98] sm:$0xff]  ;;  %v478_v6 = vld [vmem:[#allocation2 + $0xb90] sm:$0xff] }
 0x12b   :  { %1203 = vmatprep.subr.mxu1 %v515_v33  ;;  %1133 = vmatpush1.msra.mxu0 %v386_v34  ;;  %v607_v5 = vld [vmem:[#allocation2 + $0xf98] sm:$0xff]  ;;  %v606_v7 = vld [vmem:[#allocation2 + $0xf90] sm:$0xff] }
 0x12c   :  { %1204 = vmatpush1.msra.mxu1 %v514_v35  ;;  %1134 = vmatprep.subr.mxu0 %v383_v36  ;;  %v475_v9 = vld [vmem:[#allocation2 + $0xb78] sm:$0xff]  ;;  %v474_v12 = vld [vmem:[#allocation2 + $0xb70] sm:$0xff] }
 0x12d   :  { %1205 = vmatprep.subr.mxu1 %v511_v37  ;;  %1135 = vmatpush1.msra.mxu0 %v382_v38  ;;  %v603_v10 = vld [vmem:[#allocation2 + $0xf78] sm:$0xff]  ;;  %v602_v13 = vld [vmem:[#allocation2 + $0xf70] sm:$0xff] }
 0x12e   :  { %1206 = vmatpush1.msra.mxu1 %v510_v39  ;;  %1136 = vmatprep.subr.mxu0 %v379_v40  ;;  %v471_v14 = vld [vmem:[#allocation2 + $0xb58] sm:$0xff]  ;;  %v470_v17 = vld [vmem:[#allocation2 + $0xb50] sm:$0xff] }
 0x12f   :  { %1207 = vmatprep.subr.mxu1 %v507_v42  ;;  %1137 = vmatpush1.msra.mxu0 %v378_v43  ;;  %v599_v15 = vld [vmem:[#allocation2 + $0xf58] sm:$0xff]  ;;  %v598_v18 = vld [vmem:[#allocation2 + $0xf50] sm:$0xff] }
 0x130   :  { %1208 = vmatpush1.msra.mxu1 %v506_v44  ;;  %1138 = vmatprep.subr.mxu0 %v375_v45  ;;  %v467_v19 = vld [vmem:[#allocation2 + $0xb38] sm:$0xff]  ;;  %v466_v22 = vld [vmem:[#allocation2 + $0xb30] sm:$0xff] }
 0x131   :  { %1209 = vmatprep.subr.mxu1 %v503_v46  ;;  %1139 = vmatpush1.msra.mxu0 %v374_v47  ;;  %v595_v20 = vld [vmem:[#allocation2 + $0xf38] sm:$0xff]  ;;  %v594_v23 = vld [vmem:[#allocation2 + $0xf30] sm:$0xff] }
 0x132   :  { %1210 = vmatpush1.msra.mxu1 %v502_v48  ;;  %1140 = vmatprep.subr.mxu0 %v371_v49  ;;  %v463_v24 = vld [vmem:[#allocation2 + $0xb18] sm:$0xff]  ;;  %v462_v27 = vld [vmem:[#allocation2 + $0xb10] sm:$0xff] }
 0x133   :  { %1211 = vmatprep.subr.mxu1 %v499_v50  ;;  %1141 = vmatpush1.msra.mxu0 %v370_v51  ;;  %v591_v25 = vld [vmem:[#allocation2 + $0xf18] sm:$0xff]  ;;  %v590_v28 = vld [vmem:[#allocation2 + $0xf10] sm:$0xff] }
 0x134   :  { %1212 = vmatpush1.msra.mxu1 %v498_v53  ;;  %1142 = vmatprep.subr.mxu0 %v367_v54  ;;  %v459_v30 = vld [vmem:[#allocation2 + $0xaf8] sm:$0xff]  ;;  %v458_v32 = vld [vmem:[#allocation2 + $0xaf0] sm:$0xff] }
 0x135   :  { %1213 = vmatprep.subr.mxu1 %v495_v55  ;;  %1143 = vmatpush1.msra.mxu0 %v366_v56  ;;  %v587_v31 = vld [vmem:[#allocation2 + $0xef8] sm:$0xff]  ;;  %v586_v33 = vld [vmem:[#allocation2 + $0xef0] sm:$0xff] }
 0x136   :  { %1214 = vmatpush1.msra.mxu1 %v494_v57  ;;  %1144 = vmatprep.subr.mxu0 %v491_v58  ;;  %v455_v34 = vld [vmem:[#allocation2 + $0xad8] sm:$0xff]  ;;  %v454_v36 = vld [vmem:[#allocation2 + $0xad0] sm:$0xff] }
 0x137   :  { %1215 = vmatprep.subr.mxu1 %v619_v59  ;;  %1145 = vmatpush2.msra.mxu0 %v490_v60  ;;  %v583_v35 = vld [vmem:[#allocation2 + $0xed8] sm:$0xff]  ;;  %v582_v37 = vld [vmem:[#allocation2 + $0xed0] sm:$0xff] }
 0x138   :  { %1216 = vmatpush2.msra.mxu1 %v618_v8  ;;  %1146 = vmatprep.subr.mxu0 %v487_v61  ;;  %v451_v38 = vld [vmem:[#allocation2 + $0xab8] sm:$0xff]  ;;  %v450_v40 = vld [vmem:[#allocation2 + $0xab0] sm:$0xff] }
 0x139   :  { %1217 = vmatprep.subr.mxu1 %v615_v62  ;;  %1147 = vmatpush2.msra.mxu0 %v486_v63  ;;  %v579_v39 = vld [vmem:[#allocation2 + $0xeb8] sm:$0xff]  ;;  %v578_v42 = vld [vmem:[#allocation2 + $0xeb0] sm:$0xff] }
 0x13a   :  { %1218 = vmatpush2.msra.mxu1 %v614_v11  ;;  %1148 = vmatprep.subr.mxu0 %v483_v0  ;;  %v447_v43 = vld [vmem:[#allocation2 + $0xa98] sm:$0xff]  ;;  %v446_v45 = vld [vmem:[#allocation2 + $0xa90] sm:$0xff] }
 0x13b   :  { %1219 = vmatprep.subr.mxu1 %v611_v1  ;;  %1149 = vmatpush2.msra.mxu0 %v482_v3  ;;  %v575_v44 = vld [vmem:[#allocation2 + $0xe98] sm:$0xff]  ;;  %v574_v46 = vld [vmem:[#allocation2 + $0xe90] sm:$0xff]  ;;  %v1317_v1 = vld [vmem:[#allocation7 + $0xe0] sm:$0xff] }
 0x13c   :  { %1220 = vmatpush2.msra.mxu1 %v610_v2  ;;  %1150 = vmatprep.subr.mxu0 %v479_v4  ;;  %v443_v47 = vld [vmem:[#allocation2 + $0xa78] sm:$0xff]  ;;  %v442_v49 = vld [vmem:[#allocation2 + $0xa70] sm:$0xff] }
 0x13d   :  { %1221 = vmatprep.subr.mxu1 %v607_v5  ;;  %1151 = vmatpush2.msra.mxu0 %v478_v6  ;;  %v571_v48 = vld [vmem:[#allocation2 + $0xe78] sm:$0xff]  ;;  %v570_v50 = vld [vmem:[#allocation2 + $0xe70] sm:$0xff] }
 0x13e   :  { %1222 = vmatpush2.msra.mxu1 %v606_v7  ;;  %1152 = vmatprep.subr.mxu0 %v475_v9  ;;  %v439_v51 = vld [vmem:[#allocation2 + $0xa58] sm:$0xff]  ;;  %v438_v54 = vld [vmem:[#allocation2 + $0xa50] sm:$0xff] }
 0x13f   :  { %1223 = vmatprep.subr.mxu1 %v603_v10  ;;  %1153 = vmatpush2.msra.mxu0 %v474_v12  ;;  %v567_v53 = vld [vmem:[#allocation2 + $0xe58] sm:$0xff]  ;;  %v566_v55 = vld [vmem:[#allocation2 + $0xe50] sm:$0xff] }
 0x140   :  { %1224 = vmatpush2.msra.mxu1 %v602_v13  ;;  %1154 = vmatprep.subr.mxu0 %v471_v14  ;;  %v435_v56 = vld [vmem:[#allocation2 + $0xa38] sm:$0xff]  ;;  %v434_v58 = vld [vmem:[#allocation2 + $0xa30] sm:$0xff]  ;;  %v1377_v13 = vld [vmem:[#allocation7 + $0x2c0] sm:$0xff] }
 0x141   :  { %1225 = vmatprep.subr.mxu1 %v599_v15  ;;  %1155 = vmatpush2.msra.mxu0 %v470_v17  ;;  %v563_v57 = vld [vmem:[#allocation2 + $0xe38] sm:$0xff]  ;;  %v562_v59 = vld [vmem:[#allocation2 + $0xe30] sm:$0xff]  ;;  %v1309_v17 = vld [vmem:[#allocation7 + $0xa0] sm:$0xff] }
 0x142   :  { %1226 = vmatpush2.msra.mxu1 %v598_v18  ;;  %1156 = vmatprep.subr.mxu0 %v467_v19  ;;  %v431_v60 = vld [vmem:[#allocation2 + $0xa18] sm:$0xff]  ;;  %v430_v61 = vld [vmem:[#allocation2 + $0xa10] sm:$0xff] }
 0x143   :  { %1227 = vmatprep.subr.mxu1 %v595_v20  ;;  %1157 = vmatpush2.msra.mxu0 %v466_v22  ;;  %v559_v8 = vld [vmem:[#allocation2 + $0xe18] sm:$0xff]  ;;  %v558_v62 = vld [vmem:[#allocation2 + $0xe10] sm:$0xff] }
 0x144   :  { %1228 = vmatpush2.msra.mxu1 %v594_v23  ;;  %1158 = vmatprep.subr.mxu0 %v463_v24  ;;  %v1320_v63 = vld [vmem:[#allocation7 + $0xf8] sm:$0xff]  ;;  %v1319_v11 = vld [vmem:[#allocation7 + $0xf0] sm:$0xff]  ;;  %v1318_v0 = vld [vmem:[#allocation7 + $0xe8] sm:$0xff] }
 0x145   :  { %1229 = vmatprep.subr.mxu1 %v591_v25  ;;  %1159 = vmatpush2.msra.mxu0 %v462_v27  ;;  %v1316_v3 = vld [vmem:[#allocation7 + $0xd8] sm:$0xff]  ;;  %v1383_v4 = vld [vmem:[#allocation7 + $0x2f0] sm:$0xff]  ;;  %v1382_v5 = vld [vmem:[#allocation7 + $0x2e8] sm:$0xff] }
 0x146   :  { %1230 = vmatpush2.msra.mxu1 %v590_v28  ;;  %1160 = vmatprep.subr.mxu0 %v459_v30  ;;  %v1384_v2 = vld [vmem:[#allocation7 + $0x2f8] sm:$0xff]  ;;  %v1315_v6 = vld [vmem:[#allocation7 + $0xd0] sm:$0xff]  ;;  %v1314_v7 = vld [vmem:[#allocation7 + $0xc8] sm:$0xff] }
 0x147   :  { %1231 = vmatprep.subr.mxu1 %v587_v31  ;;  %1161 = vmatpush2.msra.mxu0 %v458_v32  ;;  %v1312_v9 = vld [vmem:[#allocation7 + $0xb8] sm:$0xff]  ;;  %v1378_v10 = vld [vmem:[#allocation7 + $0x2c8] sm:$0xff]  ;;  %v1311_v12 = vld [vmem:[#allocation7 + $0xb0] sm:$0xff] }
 0x148   :  { %1232 = vmatpush2.msra.mxu1 %v586_v33  ;;  %1162 = vmatprep.subr.mxu0 %v455_v34  ;;  %v1310_v14 = vld [vmem:[#allocation7 + $0xa8] sm:$0xff]  ;;  %v1376_v15 = vld [vmem:[#allocation7 + $0x2b8] sm:$0xff]  ;;  %v1375_v18 = vld [vmem:[#allocation7 + $0x2b0] sm:$0xff] }
 0x149   :  { %1233 = vmatprep.subr.mxu1 %v583_v35  ;;  %1163 = vmatpush2.msra.mxu0 %v454_v36  ;;  %v1308_v19 = vld [vmem:[#allocation7 + $0x98] sm:$0xff]  ;;  %v1374_v20 = vld [vmem:[#allocation7 + $0x2a8] sm:$0xff]  ;;  %v1307_v22 = vld [vmem:[#allocation7 + $0x90] sm:$0xff] }
 0x14a   :  { %1234 = vmatpush2.msra.mxu1 %v582_v37  ;;  %1164 = vmatprep.subr.mxu0 %v451_v38  ;;  %v1373_v23 = vld [vmem:[#allocation7 + $0x2a0] sm:$0xff]  ;;  %v1306_v24 = vld [vmem:[#allocation7 + $0x88] sm:$0xff]  ;;  %v1372_v25 = vld [vmem:[#allocation7 + $0x298] sm:$0xff] }
 0x14b   :  { %1235 = vmatprep.subr.mxu1 %v579_v39  ;;  %1165 = vmatpush2.msra.mxu0 %v450_v40  ;;  %v1305_v27 = vld [vmem:[#allocation7 + $0x80] sm:$0xff]  ;;  %v1371_v28 = vld [vmem:[#allocation7 + $0x290] sm:$0xff]  ;;  %v1304_v30 = vld [vmem:[#allocation7 + $0x78] sm:$0xff] }
 0x14c   :  { %1236 = vmatpush2.msra.mxu1 %v578_v42  ;;  %1166 = vmatprep.subr.mxu0 %v447_v43  ;;  %v1370_v31 = vld [vmem:[#allocation7 + $0x288] sm:$0xff]  ;;  %v1303_v32 = vld [vmem:[#allocation7 + $0x70] sm:$0xff]  ;;  %v1369_v33 = vld [vmem:[#allocation7 + $0x280] sm:$0xff] }
 0x14d   :  { %1237 = vmatprep.subr.mxu1 %v575_v44  ;;  %1167 = vmatpush2.msra.mxu0 %v446_v45  ;;  %v1302_v34 = vld [vmem:[#allocation7 + $0x68] sm:$0xff]  ;;  %v1368_v35 = vld [vmem:[#allocation7 + $0x278] sm:$0xff]  ;;  %v1301_v36 = vld [vmem:[#allocation7 + $0x60] sm:$0xff] }
 0x14e   :  { %1238 = vmatpush2.msra.mxu1 %v574_v46  ;;  %1168 = vmatprep.subr.mxu0 %v443_v47  ;;  %v1367_v37 = vld [vmem:[#allocation7 + $0x270] sm:$0xff]  ;;  %v1300_v38 = vld [vmem:[#allocation7 + $0x58] sm:$0xff]  ;;  %v1366_v39 = vld [vmem:[#allocation7 + $0x268] sm:$0xff] }
 0x14f   :  { %1239 = vmatprep.subr.mxu1 %v571_v48  ;;  %1169 = vmatpush2.msra.mxu0 %v442_v49  ;;  %v1299_v40 = vld [vmem:[#allocation7 + $0x50] sm:$0xff]  ;;  %v1365_v42 = vld [vmem:[#allocation7 + $0x260] sm:$0xff]  ;;  %v1298_v43 = vld [vmem:[#allocation7 + $0x48] sm:$0xff] }
 0x150   :  { %1240 = vmatpush2.msra.mxu1 %v570_v50  ;;  %1170 = vmatprep.subr.mxu0 %v439_v51  ;;  %v1364_v44 = vld [vmem:[#allocation7 + $0x258] sm:$0xff]  ;;  %v1297_v45 = vld [vmem:[#allocation7 + $0x40] sm:$0xff]  ;;  %v1363_v46 = vld [vmem:[#allocation7 + $0x250] sm:$0xff] }
 0x151   :  { %1241 = vmatprep.subr.mxu1 %v567_v53  ;;  %1171 = vmatpush2.msra.mxu0 %v438_v54  ;;  %v1296_v47 = vld [vmem:[#allocation7 + $0x38] sm:$0xff]  ;;  %v1362_v48 = vld [vmem:[#allocation7 + $0x248] sm:$0xff]  ;;  %v1295_v49 = vld [vmem:[#allocation7 + $0x30] sm:$0xff] }
 0x152   :  { %1242 = vmatpush2.msra.mxu1 %v566_v55  ;;  %1172 = vmatprep.subr.mxu0 %v435_v56  ;;  %v1361_v50 = vld [vmem:[#allocation7 + $0x240] sm:$0xff]  ;;  %v1294_v51 = vld [vmem:[#allocation7 + $0x28] sm:$0xff]  ;;  %v1360_v53 = vld [vmem:[#allocation7 + $0x238] sm:$0xff] }
 0x153   :  { %1243 = vmatprep.subr.mxu1 %v563_v57  ;;  %1173 = vmatpush2.msra.mxu0 %v434_v58  ;;  %v1293_v54 = vld [vmem:[#allocation7 + $0x20] sm:$0xff]  ;;  %v1359_v55 = vld [vmem:[#allocation7 + $0x230] sm:$0xff]  ;;  %v1292_v56 = vld [vmem:[#allocation7 + $0x18] sm:$0xff] }
 0x154   :  { %1244 = vmatpush2.msra.mxu1 %v562_v59  ;;  %1174 = vmatprep.subr.mxu0 %v431_v60  ;;  %v1358_v57 = vld [vmem:[#allocation7 + $0x228] sm:$0xff]  ;;  %v1291_v58 = vld [vmem:[#allocation7 + $0x10] sm:$0xff]  ;;  %v1357_v59 = vld [vmem:[#allocation7 + $0x220] sm:$0xff] }
 0x155   :  { %1245 = vmatprep.subr.mxu1 %v559_v8  ;;  %1175 = vmatpush2.msra.mxu0 %v430_v61  ;;  %v1290_v60 = vld [vmem:[#allocation7 + $0x8] sm:$0xff]  ;;  %v1356_v8 = vld [vmem:[#allocation7 + $0x218] sm:$0xff]  ;;  %v1289_v61 = vld [vmem:[#allocation7] sm:$0xff] }
 0x156   :  { %1176 = vmatprep.mubr.f32.mxu0 %v2051_v26  ;;  %1246 = vmatpush2.msra.mxu1 %v558_v62  ;;  %v1381_v26 = vld [vmem:[#allocation7 + $0x2e0] sm:$0xff]  ;;  %v1355_v62 = vld [vmem:[#allocation7 + $0x210] sm:$0xff] }
 0x157   :  { %1247 = vmatprep.mubr.f32.mxu1 %v2055_v29  ;;  %1177 = vmatmul.mubr.f32.vlgmr.msra.gmra.mxu0 %v2044_v16  ;;  %v1380_v29 = vld [vmem:[#allocation7 + $0x2d8] sm:$0xff]  ;;  %v1313_v16 = vld [vmem:[#allocation7 + $0xc0] sm:$0xff] }
 0x158   :  { %1248 = vmatmul.mubr.f32.vlgmr.msra.gmra.mxu1 %v2047_v21  ;;  %1429 = vmatprep.subr.mxu0 %v1320_v63  ;;  %v1379_v21 = vld [vmem:[#allocation7 + $0x2d0] sm:$0xff]  ;;  %v1352_v63 = vld [vmem:[#allocation7 + $0x1f8] sm:$0xff] }
 0x159   :  { %1430 = vmatpush1.msra.mxu0 %v1319_v11  ;;  %1500 = vmatprep.subr.mxu1 %v1384_v2  ;;  %v1354_v11 = vld [vmem:[#allocation7 + $0x208] sm:$0xff]  ;;  %v1416_v2 = vld [vmem:[#allocation7 + $0x3f8] sm:$0xff] }
 0x15a   :  { %1431 = vmatprep.subr.mxu0 %v1318_v0  ;;  %1501 = vmatpush1.msra.mxu1 %v1383_v4  ;;  %v1351_v0 = vld [vmem:[#allocation7 + $0x1f0] sm:$0xff]  ;;  %v1349_v4 = vld [vmem:[#allocation7 + $0x1e0] sm:$0xff] }
 0x15b   :  { %1432 = vmatpush1.msra.mxu0 %v1317_v1  ;;  %1502 = vmatprep.subr.mxu1 %v1382_v5  ;;  %v1353_v1 = vld [vmem:[#allocation7 + $0x200] sm:$0xff]  ;;  %v1415_v5 = vld [vmem:[#allocation7 + $0x3f0] sm:$0xff] }
 0x15c   :  { %1433 = vmatprep.subr.mxu0 %v1316_v3  ;;  %1503 = vmatpush1.msra.mxu1 %v1381_v26  ;;  %v1350_v3 = vld [vmem:[#allocation7 + $0x1e8] sm:$0xff] }
 0x15d   :  { %1434 = vmatpush1.msra.mxu0 %v1315_v6  ;;  %1504 = vmatprep.subr.mxu1 %v1380_v29  ;;  %v1348_v6 = vld [vmem:[#allocation7 + $0x1d8] sm:$0xff]  ;;  %v1414_v26 = vld [vmem:[#allocation7 + $0x3e8] sm:$0xff]  ;;  %v1413_v29 = vld [vmem:[#allocation7 + $0x3e0] sm:$0xff] }
 0x15e   :  { %1435 = vmatprep.subr.mxu0 %v1314_v7  ;;  %1505 = vmatpush1.msra.mxu1 %v1379_v21  ;;  %v1347_v7 = vld [vmem:[#allocation7 + $0x1d0] sm:$0xff]  ;;  %v1412_v21 = vld [vmem:[#allocation7 + $0x3d8] sm:$0xff] }
 0x15f   :  { %1436 = vmatpush1.msra.mxu0 %v1313_v16  ;;  %1506 = vmatprep.subr.mxu1 %v1378_v10  ;;  %v1346_v16 = vld [vmem:[#allocation7 + $0x1c8] sm:$0xff]  ;;  %v1411_v10 = vld [vmem:[#allocation7 + $0x3d0] sm:$0xff] }
 0x160   :  { %1437 = vmatprep.subr.mxu0 %v1312_v9  ;;  %1507 = vmatpush1.msra.mxu1 %v1377_v13  ;;  %v1345_v9 = vld [vmem:[#allocation7 + $0x1c0] sm:$0xff]  ;;  %v1410_v13 = vld [vmem:[#allocation7 + $0x3c8] sm:$0xff] }
 0x161   :  { %1438 = vmatpush1.msra.mxu0 %v1311_v12  ;;  %1508 = vmatprep.subr.mxu1 %v1376_v15  ;;  %v1344_v12 = vld [vmem:[#allocation7 + $0x1b8] sm:$0xff]  ;;  %v1409_v15 = vld [vmem:[#allocation7 + $0x3c0] sm:$0xff] }
 0x162   :  { %1439 = vmatprep.subr.mxu0 %v1310_v14  ;;  %1509 = vmatpush1.msra.mxu1 %v1375_v18  ;;  %v1343_v14 = vld [vmem:[#allocation7 + $0x1b0] sm:$0xff]  ;;  %v1408_v18 = vld [vmem:[#allocation7 + $0x3b8] sm:$0xff] }
 0x163   :  { %1440 = vmatpush1.msra.mxu0 %v1309_v17  ;;  %1510 = vmatprep.subr.mxu1 %v1374_v20  ;;  %v1342_v17 = vld [vmem:[#allocation7 + $0x1a8] sm:$0xff]  ;;  %v1407_v20 = vld [vmem:[#allocation7 + $0x3b0] sm:$0xff] }
 0x164   :  { %1441 = vmatprep.subr.mxu0 %v1308_v19  ;;  %1511 = vmatpush1.msra.mxu1 %v1373_v23  ;;  %v1341_v19 = vld [vmem:[#allocation7 + $0x1a0] sm:$0xff]  ;;  %v1406_v23 = vld [vmem:[#allocation7 + $0x3a8] sm:$0xff] }
 0x165   :  { %1442 = vmatpush1.msra.mxu0 %v1307_v22  ;;  %1512 = vmatprep.subr.mxu1 %v1372_v25  ;;  %v1340_v22 = vld [vmem:[#allocation7 + $0x198] sm:$0xff]  ;;  %v1405_v25 = vld [vmem:[#allocation7 + $0x3a0] sm:$0xff] }
 0x166   :  { %1443 = vmatprep.subr.mxu0 %v1306_v24  ;;  %1513 = vmatpush1.msra.mxu1 %v1371_v28  ;;  %v1339_v24 = vld [vmem:[#allocation7 + $0x190] sm:$0xff]  ;;  %v1404_v28 = vld [vmem:[#allocation7 + $0x398] sm:$0xff] }
 0x167   :  { %1444 = vmatpush1.msra.mxu0 %v1305_v27  ;;  %1514 = vmatprep.subr.mxu1 %v1370_v31  ;;  %v1338_v27 = vld [vmem:[#allocation7 + $0x188] sm:$0xff]  ;;  %v1403_v31 = vld [vmem:[#allocation7 + $0x390] sm:$0xff] }
 0x168   :  { %1445 = vmatprep.subr.mxu0 %v1304_v30  ;;  %1515 = vmatpush1.msra.mxu1 %v1369_v33  ;;  %v1337_v30 = vld [vmem:[#allocation7 + $0x180] sm:$0xff]  ;;  %v1336_v33 = vld [vmem:[#allocation7 + $0x178] sm:$0xff] }
 0x169   :  { %1446 = vmatpush1.msra.mxu0 %v1303_v32  ;;  %1516 = vmatprep.subr.mxu1 %v1368_v35  ;;  %v624_v32 = vsub.s32 0, %v2014_v41  ;;  %v2070_v35 = vld [vmem:[#allocation5] sm:$0xf] }
 0x16a   :  { %1447 = vmatprep.subr.mxu0 %v1302_v34  ;;  %1517 = vmatpush1.msra.mxu1 %v1367_v37  ;;  %v1402_v34 = vld [vmem:[#allocation7 + $0x388] sm:$0xff]  ;;  %v1401_v37 = vld [vmem:[#allocation7 + $0x380] sm:$0xff] }
 0x16b   :  { %1448 = vmatpush1.msra.mxu0 %v1301_v36  ;;  %1518 = vmatprep.subr.mxu1 %v1366_v39  ;;  %v1335_v36 = vld [vmem:[#allocation7 + $0x170] sm:$0xff]  ;;  %v1334_v39 = vld [vmem:[#allocation7 + $0x168] sm:$0xff] }
 0x16c   :  { %1449 = vmatprep.subr.mxu0 %v1300_v38  ;;  %1519 = vmatpush1.msra.mxu1 %v1365_v42  ;;  %v628_v38 = vsub.s32 1, %v2014_v41  ;;  %v752_v42 = vpop.f32.mrf.mxu0 }
 0x16d   :  { %1450 = vmatpush1.msra.mxu0 %v1299_v40  ;;  %1520 = vmatprep.subr.mxu1 %v1364_v44  ;;  %v1400_v40 = vld [vmem:[#allocation7 + $0x378] sm:$0xff]  ;;  %v1399_v44 = vld [vmem:[#allocation7 + $0x370] sm:$0xff] }
 0x16e   :  { %1451 = vmatprep.subr.mxu0 %v1298_v43  ;;  %1521 = vmatpush1.msra.mxu1 %v1363_v46  ;;  %v1333_v43 = vld [vmem:[#allocation7 + $0x160] sm:$0xff]  ;;  %v1332_v46 = vld [vmem:[#allocation7 + $0x158] sm:$0xff] }
 0x16f   :  { %1452 = vmatpush1.msra.mxu0 %v1297_v45  ;;  %1522 = vmatprep.subr.mxu1 %v1362_v48  ;;  %v625_v45 = vrot.slane %v2070_v35, %v624_v32  ;;  %v1331_v48 = vld [vmem:[#allocation7 + $0x150] sm:$0xff] }
 0x170   :  { %1453 = vmatprep.subr.mxu0 %v1296_v47  ;;  %1523 = vmatpush1.msra.mxu1 %v1361_v50  ;;  %v1398_v47 = vld [vmem:[#allocation7 + $0x368] sm:$0xff]  ;;  %v629_v50 = vrot.slane %v2070_v35, %v628_v38 }
 0x171   :  { %1454 = vmatpush1.msra.mxu0 %v1295_v49  ;;  %1524 = vmatprep.subr.mxu1 %v1360_v53  ;;  %v1397_v49 = vld [vmem:[#allocation7 + $0x360] sm:$0xff]  ;;  %v1396_v53 = vld [vmem:[#allocation7 + $0x358] sm:$0xff] }
 0x172   :  { %1455 = vmatprep.subr.mxu0 %v1294_v51  ;;  %1525 = vmatpush1.msra.mxu1 %v1359_v55  ;;  %v1330_v51 = vld [vmem:[#allocation7 + $0x148] sm:$0xff]  ;;  %v754_v55 = vpop.f32.mrf.mxu0 }
 0x173   :  { %1456 = vmatpush1.msra.mxu0 %v1293_v54  ;;  %1526 = vmatprep.subr.mxu1 %v1358_v57  ;;  %v823_v54 = vpop.f32.mrf.mxu1  ;;  %v753_v57 = vadd.f32 %v752_v42, %v625_v45  ;;  %v1616_v42 = vld [vmem:[#allocation10 + $0xd8] sm:$0xff]  ;;  %v1599_v45 = vld [vmem:[#allocation10 + $0x50] sm:$0xff] }
 0x174   :  { %1457 = vmatprep.subr.mxu0 %v1292_v56  ;;  %1527 = vmatpush1.msra.mxu1 %v1357_v59  ;;  %v1329_v56 = vld [vmem:[#allocation7 + $0x140] sm:$0xff]  ;;  %v1327_v59 = vld [vmem:[#allocation7 + $0x130] sm:$0xff] }
 0x175   :  { %1458 = vmatpush1.msra.mxu0 %v1291_v58  ;;  %1528 = vmatprep.subr.mxu1 %v1356_v8  ;;  %v1328_v58 = vld [vmem:[#allocation7 + $0x138] sm:$0xff]  ;;  %v1326_v8 = vld [vmem:[#allocation7 + $0x128] sm:$0xff] }
 0x176   :  { %1459 = vmatprep.subr.mxu0 %v1290_v60  ;;  %1529 = vmatpush1.msra.mxu1 %v1355_v62  ;;  %v755_v60 = vadd.f32 %v754_v55, %v629_v50  ;;  %v1325_v62 = vld [vmem:[#allocation7 + $0x120] sm:$0xff]  ;;  %v1610_v55 = vld [vmem:[#allocation10 + $0xa8] sm:$0xff] }
 0x177   :  { %1460 = vmatpush1.msra.mxu0 %v1289_v61  ;;  %1530 = vmatprep.subr.mxu1 %v1354_v11  ;;  %v825_v61 = vpop.f32.mrf.mxu1  ;;  %v1324_v11 = vld [vmem:[#allocation7 + $0x118] sm:$0xff] }
 0x178   :  { %1461 = vmatprep.subr.mxu0 %v1352_v63  ;;  %1531 = vmatpush1.msra.mxu1 %v1353_v1  ;;  %v824_v63 = vadd.f32 %v823_v54, %v753_v57  ;;  %v1323_v1 = vld [vmem:[#allocation7 + $0x110] sm:$0xff]  ;;  %v1612_v50 = vld [vmem:[#allocation10 + $0xb8] sm:$0xff]  ;;  %v1609_v57 = vld [vmem:[#allocation10 + $0xa0] sm:$0xff] }
 0x179   :  { %1462 = vmatpush2.msra.mxu0 %v1351_v0  ;;  %1532 = vmatprep.subr.mxu1 %v1416_v2  ;;  %v1595_v54 = vld [vmem:[#allocation10 + $0x30] sm:$0xff] }
 0x17a   :  { %1463 = vmatprep.subr.mxu0 %v1350_v3  ;;  %1533 = vmatpush2.msra.mxu1 %v1415_v5  ;;  %v826_v3 = vadd.f32 %v825_v61, %v755_v60 }
 0x17b   :  { %1464 = vmatpush2.msra.mxu0 %v1349_v4  ;;  %1534 = vmatprep.subr.mxu1 %v1414_v26  ;;  %v1322_v4 = vld [vmem:[#allocation7 + $0x108] sm:$0xff]  ;;  %v1321_v26 = vld [vmem:[#allocation7 + $0x100] sm:$0xff] }
 0x17c   :  { %1465 = vmatprep.subr.mxu0 %v1348_v6  ;;  %1535 = vmatpush2.msra.mxu1 %v1413_v29 }
 0x17d   :  { %1466 = vmatpush2.msra.mxu0 %v1347_v7  ;;  %1536 = vmatprep.subr.mxu1 %v1412_v21  ;;  %v1395_v21 = vld [vmem:[#allocation7 + $0x350] sm:$0xff] }
 0x17e   :  { %1467 = vmatprep.subr.mxu0 %v1346_v16  ;;  %1537 = vmatpush2.msra.mxu1 %v1411_v10 }
 0x17f   :  { %1468 = vmatpush2.msra.mxu0 %v1345_v9  ;;  %1538 = vmatprep.subr.mxu1 %v1410_v13  ;;  %v1393_v13 = vld [vmem:[#allocation7 + $0x340] sm:$0xff] }
 0x180   :  { %1469 = vmatprep.subr.mxu0 %v1344_v12  ;;  %1539 = vmatpush2.msra.mxu1 %v1409_v15  ;;  %v1394_v12 = vld [vmem:[#allocation7 + $0x348] sm:$0xff]  ;;  %v1392_v15 = vld [vmem:[#allocation7 + $0x338] sm:$0xff] }
 0x181   :  { %1470 = vmatpush2.msra.mxu0 %v1343_v14  ;;  %1540 = vmatprep.subr.mxu1 %v1408_v18 }
 0x182   :  { %1471 = vmatprep.subr.mxu0 %v1342_v17  ;;  %1541 = vmatpush2.msra.mxu1 %v1407_v20  ;;  %v1391_v17 = vld [vmem:[#allocation7 + $0x330] sm:$0xff]  ;;  %v1390_v20 = vld [vmem:[#allocation7 + $0x328] sm:$0xff] }
 0x183   :  { %1472 = vmatpush2.msra.mxu0 %v1341_v19  ;;  %1542 = vmatprep.subr.mxu1 %v1406_v23  ;;  %v1389_v23 = vld [vmem:[#allocation7 + $0x320] sm:$0xff] }
 0x184   :  { %1473 = vmatprep.subr.mxu0 %v1340_v22  ;;  %1543 = vmatpush2.msra.mxu1 %v1405_v25  ;;  %v1387_v25 = vld [vmem:[#allocation7 + $0x310] sm:$0xff] }
 0x185   :  { %1474 = vmatpush2.msra.mxu0 %v1339_v24  ;;  %1544 = vmatprep.subr.mxu1 %v1404_v28  ;;  %v1388_v24 = vld [vmem:[#allocation7 + $0x318] sm:$0xff]  ;;  %v1385_v28 = vld [vmem:[#allocation7 + $0x300] sm:$0xff] }
 0x186   :  { %1475 = vmatprep.subr.mxu0 %v1338_v27  ;;  %1545 = vmatpush2.msra.mxu1 %v1403_v31  ;;  %v1386_v27 = vld [vmem:[#allocation7 + $0x308] sm:$0xff]  ;;  %v1604_v31 = vld [vmem:[#allocation10 + $0x78] sm:$0xff] }
 0x187   :  { %1476 = vmatpush2.msra.mxu0 %v1337_v30  ;;  %1546 = vmatprep.subr.mxu1 %v1402_v34  ;;  %v1620_v30 = vld [vmem:[#allocation10 + $0xf8] sm:$0xff]  ;;  %v1603_v34 = vld [vmem:[#allocation10 + $0x70] sm:$0xff] }
 0x188   :  { %1477 = vmatprep.subr.mxu0 %v1336_v33  ;;  %1547 = vmatpush2.msra.mxu1 %v1401_v37  ;;  %v1619_v33 = vld [vmem:[#allocation10 + $0xf0] sm:$0xff]  ;;  %v1602_v37 = vld [vmem:[#allocation10 + $0x68] sm:$0xff] }
 0x189   :  { %1478 = vmatpush2.msra.mxu0 %v1335_v36  ;;  %1548 = vmatprep.subr.mxu1 %v1400_v40  ;;  %v1618_v36 = vld [vmem:[#allocation10 + $0xe8] sm:$0xff]  ;;  %v1601_v40 = vld [vmem:[#allocation10 + $0x60] sm:$0xff] }
 0x18a   :  { %1479 = vmatprep.subr.mxu0 %v1334_v39  ;;  %1549 = vmatpush2.msra.mxu1 %v1399_v44  ;;  %v1617_v39 = vld [vmem:[#allocation10 + $0xe0] sm:$0xff]  ;;  %v1615_v44 = vld [vmem:[#allocation10 + $0xd0] sm:$0xff] }
 0x18b   :  { %1480 = vmatpush2.msra.mxu0 %v1333_v43  ;;  %1550 = vmatprep.subr.mxu1 %v1398_v47  ;;  %v1600_v43 = vld [vmem:[#allocation10 + $0x58] sm:$0xff]  ;;  %v1598_v47 = vld [vmem:[#allocation10 + $0x48] sm:$0xff] }
 0x18c   :  { %1481 = vmatprep.subr.mxu0 %v1332_v46  ;;  %1551 = vmatpush2.msra.mxu1 %v1397_v49  ;;  %v1614_v46 = vld [vmem:[#allocation10 + $0xc8] sm:$0xff]  ;;  %v1597_v49 = vld [vmem:[#allocation10 + $0x40] sm:$0xff] }
 0x18d   :  { %1482 = vmatpush2.msra.mxu0 %v1331_v48  ;;  %1552 = vmatprep.subr.mxu1 %v1396_v53  ;;  %v1613_v48 = vld [vmem:[#allocation10 + $0xc0] sm:$0xff]  ;;  %v1611_v53 = vld [vmem:[#allocation10 + $0xb0] sm:$0xff] }
 0x18e   :  { %1483 = vmatprep.subr.mxu0 %v1330_v51  ;;  %1553 = vmatpush2.msra.mxu1 %v1395_v21  ;;  %v1596_v51 = vld [vmem:[#allocation10 + $0x38] sm:$0xff] }
 0x18f   :  { %1484 = vmatpush2.msra.mxu0 %v1329_v56  ;;  %1554 = vmatprep.subr.mxu1 %v1394_v12  ;;  %v1594_v56 = vld [vmem:[#allocation10 + $0x28] sm:$0xff] }
 0x190   :  { %1485 = vmatprep.subr.mxu0 %v1328_v58  ;;  %1555 = vmatpush2.msra.mxu1 %v1393_v13  ;;  %v632_v58 = vsub.s32 2, %v2014_v41 }
 0x191   :  { %1486 = vmatpush2.msra.mxu0 %v1327_v59  ;;  %1556 = vmatprep.subr.mxu1 %v1392_v15  ;;  %v636_v59 = vsub.s32 3, %v2014_v41 }
 0x192   :  { %1487 = vmatprep.subr.mxu0 %v1326_v8  ;;  %1557 = vmatpush2.msra.mxu1 %v1391_v17  ;;  %v633_v8 = vrot.slane %v2070_v35, %v632_v58 }
 0x193   :  { %v894_v0 = vpop.f32.mrf.mxu0  ;;  %1488 = vmatpush2.msra.mxu0 %v1325_v62  ;;  %1558 = vmatprep.subr.mxu1 %v1390_v20  ;;  %v637_v61 = vrot.slane %v2070_v35, %v636_v59  ;;  %v1593_v20 = vld [vmem:[#allocation10 + $0x20] sm:$0xff] }
 0x194   :  { %v895_v2 = vadd.f32 %v894_v0, %v824_v63  ;;  %1489 = vmatprep.subr.mxu0 %v1324_v11  ;;  %1559 = vmatpush2.msra.mxu1 %v1389_v23  ;;  %v1608_v23 = vld [vmem:[#allocation10 + $0x98] sm:$0xff] }
 0x195   :  { %v965_v5 = vpop.f32.mrf.mxu1  ;;  %v896_v6 = vpop.f32.mrf.mxu0  ;;  %1490 = vmatpush2.msra.mxu0 %v1323_v1  ;;  %1560 = vmatprep.subr.mxu1 %v1388_v24  ;;  %v1592_v24 = vld [vmem:[#allocation10 + $0x18] sm:$0xff] }
 0x196   :  { %v966_v7 = vadd.f32 %v965_v5, %v895_v2  ;;  %v897_v29 = vadd.f32 %v896_v6, %v826_v3  ;;  %1491 = vmatprep.subr.mxu0 %v1322_v4  ;;  %1561 = vmatpush2.msra.mxu1 %v1387_v25  ;;  %v1607_v25 = vld [vmem:[#allocation10 + $0x90] sm:$0xff] }
 0x197   :  { %v967_v16 = vpop.f32.mrf.mxu1  ;;  %1492 = vmatpush2.msra.mxu0 %v1321_v26  ;;  %1562 = vmatprep.subr.mxu1 %v1386_v27  ;;  %v1591_v27 = vld [vmem:[#allocation10 + $0x10] sm:$0xff] }
 0x198   :  { %v1258_v9 = vmul.f32 0.2, %v966_v7  ;;  %v968_v10 = vadd.f32 %v967_v16, %v897_v29  ;;  %vm1254_vm0 = vcmp.ge.f32.partialorder %v966_v7, 0.0  ;;  %1563 = vmatpush2.msra.mxu1 %v1385_v28  ;;  %1729 = vmatprep.subr.mxu0 %v1620_v30  ;;  %v1606_v28 = vld [vmem:[#allocation10 + $0x88] sm:$0xff] }
 0x19a   :  { %v1259_v14 = vmul.f32 0.2, %v968_v10  ;;  %vm1255_vm1 = vcmp.ge.f32.partialorder %v968_v10, 0.0  ;;  %v2079_v18 = vsel %vm1254_vm0, %v966_v7, %v1258_v9 }
 0x19c   :  { %v2081_v19 = vsel %vm1255_vm1, %v968_v10, %v1259_v14 }
 0x19d   :  { %v1270_v22 = vcombine.low %v2079_v18, %v2081_v19  ;;  %1493 = vmatprep.mubr.f32.mxu0 %v2081_v19  ;;  %v1605_v19 = vld [vmem:[#allocation10 + $0x80] sm:$0xff] }
 0x19e   :  { %1494 = vmatmul.mubr.f32.vlgmr.msra.gmra.mxu0 %v2079_v18  ;;  %v1590_v18 = vld [vmem:[#allocation10 + $0x8] sm:$0xff] }
 0x19f   :  { %1730 = vmatpush3.msra.mxu0 %v1604_v31  ;;  %v1278_v14 = vrot.slane %v1270_v22, %v2020_v52  ;;  %v1417_v22 = vld [vmem:[#allocation8] sm:$0x3] }
 0x1a0   :  { %1731 = vmatprep.subr.mxu0 %v1619_v33  ;;  %v1422_v31 = vrot.slane %v1417_v22, %v624_v32  ;;  %v1426_v33 = vrot.slane %v1417_v22, %v628_v38  ;;  %v1728_v32 = vld [vmem:[#allocation11] ss:$0 sm:$0xff] }
 0x1a1   :  { %1732 = vmatpush3.msra.mxu0 %v1603_v34 }
 0x1a2   :  { %1733 = vmatprep.subr.mxu0 %v1618_v36 }
 0x1a3   :  { %1734 = vmatpush3.msra.mxu0 %v1602_v37 }
 0x1a4   :  { %1735 = vmatprep.subr.mxu0 %v1617_v39 }
 0x1a5   :  { %1736 = vmatpush3.msra.mxu0 %v1601_v40 }
 0x1a6   :  { %1737 = vmatprep.subr.mxu0 %v1616_v42 }
 0x1a7   :  { %1738 = vmatpush3.msra.mxu0 %v1600_v43 }
 0x1a8   :  { %1739 = vmatprep.subr.mxu0 %v1615_v44 }
 0x1a9   :  { %1740 = vmatpush3.msra.mxu0 %v1599_v45 }
 0x1aa   :  { %1741 = vmatprep.subr.mxu0 %v1614_v46 }
 0x1ab   :  { %1742 = vmatpush3.msra.mxu0 %v1598_v47 }
 0x1ac   :  { %1743 = vmatprep.subr.mxu0 %v1613_v48 }
 0x1ad   :  { %1744 = vmatpush3.msra.mxu0 %v1597_v49 }
 0x1ae   :  { %1745 = vmatprep.subr.mxu0 %v1612_v50 }
 0x1af   :  { %1746 = vmatpush3.msra.mxu0 %v1596_v51 }
 0x1b0   :  { %1747 = vmatprep.subr.mxu0 %v1611_v53 }
 0x1b1   :  { %1748 = vmatpush3.msra.mxu0 %v1595_v54 }
 0x1b2   :  { %1749 = vmatprep.subr.mxu0 %v1610_v55 }
 0x1b3   :  { %1750 = vmatpush3.msra.mxu0 %v1594_v56 }
 0x1b4   :  { %1751 = vmatprep.subr.mxu0 %v1609_v57 }
 0x1b5   :  { %1752 = vmatpush3.msra.mxu0 %v1593_v20 }
 0x1b6   :  { %1753 = vmatprep.subr.mxu0 %v1608_v23 }
 0x1b7   :  { %1754 = vmatpush3.msra.mxu0 %v1592_v24 }
 0x1b8   :  { %1755 = vmatprep.subr.mxu0 %v1607_v25 }
 0x1b9   :  { %1756 = vmatpush3.msra.mxu0 %v1591_v27 }
 0x1ba   :  { %1757 = vmatprep.subr.mxu0 %v1606_v28 }
 0x1bb   :  { %1758 = vmatpush3.msra.mxu0 %v1590_v18 }
 0x1bc   :  { %1759 = vmatprep.subr.mxu0 %v1605_v19 }
 0x1d5   :  { %v1036_v60 = vpop.f32.mrf.mxu0 }
 0x1d6   :  { %v1037_v11 = vadd.f32 %v1036_v60, %v633_v8 }
 0x1d7   :  { %v1107_v62 = vpop.f32.mrf.mxu1  ;;  %v1038_v63 = vpop.f32.mrf.mxu0 }
 0x1d8   :  { %v1039_v0 = vadd.f32 %v1038_v63, %v637_v61  ;;  %v1108_v3 = vadd.f32 %v1107_v62, %v1037_v11 }
 0x1d9   :  { %v1109_v1 = vpop.f32.mrf.mxu1 }
 0x1da   :  { %v1110_v5 = vadd.f32 %v1109_v1, %v1039_v0 }
 0x217   :  { %v1178_v2 = vpop.f32.mrf.mxu0 }
 0x218   :  { %v1249_v4 = vpop.f32.mrf.mxu1  ;;  %v1179_v6 = vadd.f32 %v1178_v2, %v1108_v3 }
 0x219   :  { %v1180_v26 = vpop.f32.mrf.mxu0 }
 0x21a   :  { %v1250_v7 = vadd.f32 %v1249_v4, %v1179_v6  ;;  %v1181_v29 = vadd.f32 %v1180_v26, %v1110_v5  ;;  %v1251_v16 = vpop.f32.mrf.mxu1 }
 0x21c   :  { %v1260_v21 = vmul.f32 0.2, %v1250_v7  ;;  %v1252_v9 = vadd.f32 %v1251_v16, %v1181_v29  ;;  %vm1256_vm2 = vcmp.ge.f32.partialorder %v1250_v7, 0.0 }
 0x21e   :  { %v1261_v10 = vmul.f32 0.2, %v1252_v9  ;;  %vm1257_vm3 = vcmp.ge.f32.partialorder %v1252_v9, 0.0  ;;  %v1264_v35 = vsel %vm1256_vm2, %v1250_v7, %v1260_v21 }
 0x220   :  { %v1265_v12 = vsel %vm1257_vm3, %v1252_v9, %v1261_v10 }
 0x221   :  { %v1271_v13 = vcombine.low %v1264_v35, %v1265_v12  ;;  %1564 = vmatprep.mubr.f32.mxu1 %v1265_v12 }
 0x222   :  { %1565 = vmatmul.mubr.f32.vlgmr.msra.gmra.mxu1 %v1264_v35 }
 0x223   :  { %v1285_v15 = vrot.slane %v1271_v13, %v2020_v52  ;;  %v1589_v52 = vld [vmem:[#allocation10] sm:$0xff] }
 0x224   :  { %1760 = vmatpush3.msra.mxu0 %v1589_v52 }
 0x225   :  { %v1286_v17 = vcombine.low %v1278_v14, %v1285_v15 }
 0x227   :  { %1288 = vst [vmem:[%s2116_s7] sm:$0xff] %v1286_v17 }
 0x25e   :  { %v1495_v30 = vpop.f32.mrf.mxu0 }
 0x25f   :  { %v1496_v36 = vadd.f32 %v1495_v30, %v1422_v31 }
 0x260   :  { %v1497_v34 = vpop.f32.mrf.mxu0 }
 0x261   :  { %v1498_v39 = vadd.f32 %v1497_v34, %v1426_v33 }
 0x2e2   :  { %v1566_v37 = vpop.f32.mrf.mxu1 }
 0x2e3   :  { %v1567_v40 = vadd.f32 %v1566_v37, %v1496_v36 }
 0x2e4   :  { %v1568_v42 = vpop.f32.mrf.mxu1 }
 0x2e5   :  { %v1573_v43 = vmul.f32 0.2, %v1567_v40  ;;  %v1569_v44 = vadd.f32 %v1568_v42, %v1498_v39  ;;  %vm1571_vm4 = vcmp.ge.f32.partialorder %v1567_v40, 0.0 }
 0x2e7   :  { %v1574_v45 = vmul.f32 0.2, %v1569_v44  ;;  %vm1572_vm5 = vcmp.ge.f32.partialorder %v1569_v44, 0.0  ;;  %v1575_v46 = vsel %vm1571_vm4, %v1567_v40, %v1573_v43 }
 0x2e9   :  { %v1576_v47 = vsel %vm1572_vm5, %v1569_v44, %v1574_v45 }
 0x2ea   :  { %v1579_v48 = vcombine.low %v1575_v46, %v1576_v47  ;;  %1692 = vmatprep.mubr.f32.mxu0 %v1576_v47 }
 0x2eb   :  { %1693 = vmatmul.mubr.f32.vlgmr.msra.gmra.mxu0 %v1575_v46 }
 0x2ec   :  { %1727 = vst.sshfl [vmem:[%s2117_s8] sm:$0x33 pattern:$0x76325410] %v1579_v48 }
 0x3ab   :  { %v1761_v41 = vpop.f32.mrf.mxu0 }
 0x3ad   :  { %v1762_v38 = vpop.f32.mrf.mxu0 }
 0x3ae   :  { %v1763_v49 = vadd.f32 %v1762_v38, %v1761_v41 }
 0x3b0   :  { %v1695_v50 = vadd.f32 %v1763_v49, %v1728_v32 }
 0x3b2   :  { %1780 = vtanh.f32 %v1695_v50 }
 0x3bf   :  { %v1781_v51 = vpop.eup %1780 }
 0x3c0   :  { %1700 = vst.msk [vmem:[#allocation13] sm:$0x3] %vm1699_vm6, %v1781_v51 }
 0x3c1   :  { %1913 = shalt.err (!%p1910_p6)
}
 0x3c2   :  { %1714 = dma.vmem_to_hbm [thread:$0]  %s1712_s25, 32, %s2118_s9, [#allocation4]  }
 0x3c3   :  { %1930 = dma.done.wait [#allocation4], 32  }
 0x3c4   :  { %1931 = vsyncadd [#allocation4], 4294967264 }
 0x3c5   :  { %1722 = vsyncpa [#allocation3], 1 }
 0x3c6   :  { %1723 = vsyncpa [#allocation6], 1 }
 0x3c7   :  { %1724 = vsyncpa [#allocation9], 1 }
 0x3c8   :  { %1725 = vsyncpa [#allocation12], 1 }
 0x3c9   :  { %1726 = vsyncpa [#allocation4], 1 }

</bundles_post_ra>
